<compile_context>
chip_gen: v7x
topology: tpu7x:2x2x1
jax: 0.10.0
libtpu: 0.0.40
codegen_flags: <defaults>
</compile_context>

<pallas_src>
import math
import functools

import jax
import jax.numpy as jnp
import numpy as np
from jax.experimental import pallas as pl
from jax.experimental.pallas import tpu as pltpu

LOG_2PI = math.log(2.0 * math.pi)


def _round_up(v, m):
    return ((v + m - 1) // m) * m


def _gauss_mix_loss_kernel(x_ref, tgt_ref, mask_ref, w_ref, b_ref,
                           tmat_ref, smat_ref, out_ref, *, num_predictions):
    """One batch tile: fused matmul -> mixture log-pdf -> lane-dense store."""
    K = num_predictions
    sec_md = smat_ref.shape[0]          # round_up(K*D, 128)
    sec_k = smat_ref.shape[1]           # round_up(K,   128)

    x = x_ref[...]                                                        # (TB, F)
    # Single fused MXU matmul producing [logits | means | log_vars] sections.
    h = jnp.dot(x, w_ref[...], preferred_element_type=jnp.float32) + b_ref[...]

    logits = h[:, :sec_k]                                                 # (TB, sec_k)
    mean = h[:, sec_k:sec_k + sec_md]                                     # (TB, sec_md)
    log_var = h[:, sec_k + sec_md:]                                       # (TB, sec_md)

    # Masked log_softmax over the first K lanes (padded lanes -> -1e30).
    lane = jax.lax.broadcasted_iota(jnp.int32, logits.shape, 1)
    logits_m = jnp.where(lane < K, logits, jnp.float32(-1e30))
    mx = jnp.max(logits_m, axis=-1, keepdims=True)
    lse = jnp.log(jnp.sum(jnp.exp(logits_m - mx), axis=-1, keepdims=True))
    log_weights = logits_m - mx - lse                                     # (TB, sec_k)

    # Replicate target K times across lanes on the MXU (constant 0/1 matrix).
    tgt = tgt_ref[...].astype(jnp.float32)                                # (TB, D)
    tgt_rep = jnp.dot(tgt, tmat_ref[...], preferred_element_type=jnp.float32)

    diff = tgt_rep - mean
    per_elem = LOG_2PI + log_var + diff * jnp.exp(-log_var) * diff        # (TB, sec_md)
    # Per-component sum over D = block-diagonal segment-sum matmul (MXU).
    # Padded rows of smat are zero, so lane padding never contaminates sums.
    lp_gauss = -0.5 * jnp.dot(per_elem, smat_ref[...],
                              preferred_element_type=jnp.float32)         # (TB, sec_k)

    lp = lp_gauss + log_weights                                           # padded lanes ~ -1e30

    # Transpose so batch is the lane dimension -> lane-dense (1, TB) store.
    lp_t = jnp.transpose(lp)                                              # (sec_k, TB)
    m2 = jnp.max(lp_t, axis=0, keepdims=True)                             # (1, TB)
    ssum = jnp.sum(jnp.exp(lp_t - m2), axis=0, keepdims=True)             # (1, TB)
    log_prob = m2 + jnp.log(ssum)                                         # (1, TB)

    out_ref[0] = -(log_prob * mask_ref[0])


def init_params(key, in_features, out_features, num_predictions):
    """Deterministic PyTorch-style Linear init: U(-1/sqrt(F), 1/sqrt(F))."""
    F, D, K = in_features, out_features, num_predictions
    ks = jax.random.split(key, 6)
    bound = 1.0 / math.sqrt(F)
    u = lambda k, shape: jax.random.uniform(k, shape, jnp.float32, -bound, bound)
    return {
        "w_weights": u(ks[0], (F, K)),        # to_weights.weight^T
        "b_weights": u(ks[1], (1, K)),
        "w_mean":    u(ks[2], (F, K * D)),    # K mean-Linears packed column-wise
        "b_mean":    u(ks[3], (1, K * D)),
        "w_logvar":  u(ks[4], (F, K * D)),    # K log_var-Linears packed column-wise
        "b_logvar":  u(ks[5], (1, K * D)),
    }


def _pack_operands(params, K, D, dtype):
    """Fuse all Linears into one lane-padded (F, N) matrix + helper matrices."""
    F = params["w_weights"].shape[0]
    sec_k = _round_up(K, 128)
    sec_md = _round_up(K * D, 128)
    N = sec_k + 2 * sec_md

    w = jnp.zeros((F, N), jnp.float32)
    w = w.at[:, :K].set(params["w_weights"])
    w = w.at[:, sec_k:sec_k + K * D].set(params["w_mean"])
    w = w.at[:, sec_k + sec_md:sec_k + sec_md + K * D].set(params["w_logvar"])

    b = jnp.zeros((1, N), jnp.float32)
    b = b.at[:, :K].set(params["b_weights"])
    b = b.at[:, sec_k:sec_k + K * D].set(params["b_mean"])
    b = b.at[:, sec_k + sec_md:sec_k + sec_md + K * D].set(params["b_logvar"])

    # Target replication matrix: tmat[d, k*D + d] = 1.
    tmat = np.zeros((D, sec_md), np.float32)
    for k in range(K):
        tmat[np.arange(D), k * D + np.arange(D)] = 1.0
    # Segment-sum matrix: smat[k*D + d, k] = 1 (zero outside -> masks padding).
    smat = np.zeros((sec_md, sec_k), np.float32)
    for k in range(K):
        smat[k * D:(k + 1) * D, k] = 1.0

    return w.astype(dtype), b, jnp.asarray(tmat), jnp.asarray(smat)


def isotropic_gauss_mix_loss(x, target, params, num_predictions, out_features,
                             mask=None, block_rows=128):
    B, F = x.shape
    K, D = num_predictions, out_features
    TB = block_rows
    assert TB % 128 == 0, "block_rows must be a multiple of 128 (lane-dense output)"
    B_pad = _round_up(B, TB)
    G = B_pad // TB

    w_fused, b_fused, tmat, smat = _pack_operands(params, K, D, x.dtype)
    sec_md, sec_k = smat.shape
    N = sec_k + 2 * sec_md

    if mask is None:
        mask_flat = jnp.ones((B,), jnp.float32)
    else:
        mask_flat = jnp.reshape(mask, (B,)).astype(jnp.float32)

    # Pad the batch to a multiple of the row tile; padded rows are masked out
    # in-kernel (mask padded with zeros) and sliced away on return.
    x_p = jnp.pad(x, ((0, B_pad - B), (0, 0)))
    t_p = jnp.pad(target, ((0, B_pad - B), (0, 0)))
    m_p = jnp.pad(mask_flat, (0, B_pad - B)).reshape(G, 1, TB)

    kernel = functools.partial(_gauss_mix_loss_kernel, num_predictions=K)

    out = pl.pallas_call(
        kernel,
        out_shape=jax.ShapeDtypeStruct((G, 1, TB), jnp.float32),
        grid=(G,),
        in_specs=[
            pl.BlockSpec((TB, F), lambda i: (i, 0)),            # x tile
            pl.BlockSpec((TB, D), lambda i: (i, 0)),            # target tile
            pl.BlockSpec((1, 1, TB), lambda i: (i, 0, 0)),      # mask row
            pl.BlockSpec((F, N), lambda i: (0, 0)),             # fused weights (resident)
            pl.BlockSpec((1, N), lambda i: (0, 0)),             # fused bias (resident)
            pl.BlockSpec((D, sec_md), lambda i: (0, 0)),        # target replication matrix
            pl.BlockSpec((sec_md, sec_k), lambda i: (0, 0)),    # segment-sum matrix
        ],
        out_specs=pl.BlockSpec((1, 1, TB), lambda i: (i, 0, 0)),
        compiler_params=pltpu.CompilerParams(
            dimension_semantics=("parallel",)),
    )(x_p, t_p, m_p, w_fused, b_fused, tmat, smat)

    return out.reshape(B_pad)[:B]


def _reference(x, target, params, K, D, mask=None):
    """Pure-JAX reference mirroring the PyTorch forward."""
    logits = x @ params["w_weights"] + params["b_weights"]
    log_weights = jax.nn.log_softmax(logits, axis=-1)                    # (B, K)
    mean = (x @ params["w_mean"] + params["b_mean"]).reshape(-1, K, D)
    log_var = (x @ params["w_logvar"] + params["b_logvar"]).reshape(-1, K, D)
    diff = target[:, None, :] - mean
    lp_g = -0.5 * jnp.sum(LOG_2PI + log_var + diff * jnp.exp(-log_var) * diff, axis=-1)
    log_prob = jax.nn.logsumexp(lp_g + log_weights, axis=-1)
    if mask is not None:
        log_prob = log_prob * mask.reshape(-1)
    return -log_prob


if __name__ == "__main__":
    B, F, D, K = 8, 32, 16, 4   # batch, in_features, out_features, num_predictions

    key = jax.random.PRNGKey(0)
    kp, kx, kt, km = jax.random.split(key, 4)
    params = init_params(kp, F, D, K)
    x = jax.random.normal(kx, (B, F), jnp.float32)
    target = jax.random.normal(kt, (B, D), jnp.float32)
    mask = (jax.random.uniform(km, (B,)) > 0.3).astype(jnp.float32)

    out = isotropic_gauss_mix_loss(x, target, params, K, D, mask=mask)
    out = jax.block_until_ready(out)

    ref = _reference(x, target, params, K, D, mask=mask)
    np.testing.assert_allclose(np.asarray(out), np.asarray(ref), rtol=1e-4, atol=1e-4)

    # also exercise the mask=None path
    out_nomask = jax.block_until_ready(
        isotropic_gauss_mix_loss(x, target, params, K, D, mask=None))
    ref_nomask = _reference(x, target, params, K, D, mask=None)
    np.testing.assert_allclose(np.asarray(out_nomask), np.asarray(ref_nomask),
                               rtol=1e-4, atol=1e-4)

    print("KERNEL_OK")
</pallas_src>

<mosaic_0001>
module attributes {stable_mosaic.version = 11 : i64} {
  func.func @_gauss_mix_loss_kernel(%arg0: i32, %arg1: memref<128x32xf32, #tpu.memory_space<vmem>>, %arg2: memref<128x16xf32, #tpu.memory_space<vmem>>, %arg3: memref<1x1x128xf32, #tpu.memory_space<vmem>>, %arg4: memref<32x384xf32, #tpu.memory_space<vmem>>, %arg5: memref<1x384xf32, #tpu.memory_space<vmem>>, %arg6: memref<16x128xf32, #tpu.memory_space<vmem>>, %arg7: memref<128x128xf32, #tpu.memory_space<vmem>>, %arg8: memref<1x1x128xf32, #tpu.memory_space<vmem>>) attributes {dimension_semantics = [#tpu.dimension_semantics<parallel>], iteration_bounds = array<i64: 1>, scalar_prefetch = 0 : i64, scratch_operands = 0 : i64, tpu.core_type = #tpu.core_type<tc>, window_params = [{transform_indices = @transform_0, window_bounds = array<i64: 128, 32>}, {transform_indices = @transform_1, window_bounds = array<i64: 128, 16>}, {transform_indices = @transform_2, window_bounds = array<i64: 1, 1, 128>}, {pipeline_mode = #tpu.pipeline_mode<synchronous>, transform_indices = @transform_3, window_bounds = array<i64: 32, 384>}, {pipeline_mode = #tpu.pipeline_mode<synchronous>, transform_indices = @transform_4, window_bounds = array<i64: 1, 384>}, {pipeline_mode = #tpu.pipeline_mode<synchronous>, transform_indices = @transform_5, window_bounds = array<i64: 16, 128>}, {pipeline_mode = #tpu.pipeline_mode<synchronous>, transform_indices = @transform_6, window_bounds = array<i64: 128, 128>}, {transform_indices = @transform_7, window_bounds = array<i64: 1, 1, 128>}]} {
    %c0 = arith.constant 0 : index
    %c0_0 = arith.constant 0 : index
    %0 = vector.load %arg1[%c0, %c0_0] : memref<128x32xf32, #tpu.memory_space<vmem>>, vector<128x32xf32>
    %c0_1 = arith.constant 0 : index
    %c0_2 = arith.constant 0 : index
    %1 = vector.load %arg4[%c0_1, %c0_2] : memref<32x384xf32, #tpu.memory_space<vmem>>, vector<32x384xf32>
    %cst = arith.constant dense<0.000000e+00> : vector<128x384xf32>
    %2 = tpu.matmul %0, %1, %cst {dimension_numbers = #tpu.dot_dimension_numbers<[1], [0], [0], [1], [0, 0, 1, 1], [], []>} : vector<128x32xf32>, vector<32x384xf32>, vector<128x384xf32> -> vector<128x384xf32>
    %c0_3 = arith.constant 0 : index
    %c0_4 = arith.constant 0 : index
    %3 = vector.load %arg5[%c0_3, %c0_4] : memref<1x384xf32, #tpu.memory_space<vmem>>, vector<1x384xf32>
    %4 = vector.broadcast %3 : vector<1x384xf32> to vector<128x384xf32>
    %5 = arith.addf %2, %4 : vector<128x384xf32>
    %6 = vector.extract_strided_slice %5 {offsets = [0, 0], sizes = [128, 128], strides = [1, 1]} : vector<128x384xf32> to vector<128x128xf32>
    %7 = vector.extract_strided_slice %5 {offsets = [0, 128], sizes = [128, 128], strides = [1, 1]} : vector<128x384xf32> to vector<128x128xf32>
    %8 = vector.extract_strided_slice %5 {offsets = [0, 256], sizes = [128, 128], strides = [1, 1]} : vector<128x384xf32> to vector<128x128xf32>
    %9 = tpu.iota {dimensions = array<i32: 1>} : vector<128x128xi32>
    %c4_i32 = arith.constant 4 : i32
    %10 = vector.broadcast %c4_i32 : i32 to vector<128x128xi32>
    %11 = arith.cmpi slt, %9, %10 : vector<128x128xi32>
    %cst_5 = arith.constant -1.000000e+30 : f32
    %12 = vector.broadcast %cst_5 : f32 to vector<128x128xf32>
    %13 = arith.select %11, %6, %12 : vector<128x128xi1>, vector<128x128xf32>
    %cst_6 = arith.constant dense<0xFF800000> : vector<128xf32>
    %14 = vector.multi_reduction <maximumf>, %13, %cst_6 [1] : vector<128x128xf32> to vector<128xf32>
    %15 = vector.shape_cast %14 : vector<128xf32> to vector<128x1xf32>
    %16 = vector.broadcast %15 : vector<128x1xf32> to vector<128x128xf32>
    %17 = arith.subf %13, %16 : vector<128x128xf32>
    %18 = math.exp %17 : vector<128x128xf32>
    %cst_7 = arith.constant dense<0.000000e+00> : vector<128xf32>
    %19 = vector.multi_reduction <add>, %18, %cst_7 [1] : vector<128x128xf32> to vector<128xf32>
    %20 = vector.shape_cast %19 : vector<128xf32> to vector<128x1xf32>
    %21 = math.log %20 : vector<128x1xf32>
    %22 = vector.broadcast %15 : vector<128x1xf32> to vector<128x128xf32>
    %23 = arith.subf %13, %22 : vector<128x128xf32>
    %24 = vector.broadcast %21 : vector<128x1xf32> to vector<128x128xf32>
    %25 = arith.subf %23, %24 : vector<128x128xf32>
    %c0_8 = arith.constant 0 : index
    %c0_9 = arith.constant 0 : index
    %26 = vector.load %arg2[%c0_8, %c0_9] : memref<128x16xf32, #tpu.memory_space<vmem>>, vector<128x16xf32>
    %c0_10 = arith.constant 0 : index
    %c0_11 = arith.constant 0 : index
    %27 = vector.load %arg6[%c0_10, %c0_11] : memref<16x128xf32, #tpu.memory_space<vmem>>, vector<16x128xf32>
    %cst_12 = arith.constant dense<0.000000e+00> : vector<128x128xf32>
    %28 = tpu.matmul %26, %27, %cst_12 {dimension_numbers = #tpu.dot_dimension_numbers<[1], [0], [0], [1], [0, 0, 1, 1], [], []>} : vector<128x16xf32>, vector<16x128xf32>, vector<128x128xf32> -> vector<128x128xf32>
    %29 = arith.subf %28, %7 : vector<128x128xf32>
    %cst_13 = arith.constant 1.83787704 : f32
    %30 = vector.broadcast %cst_13 : f32 to vector<128x128xf32>
    %31 = arith.addf %30, %8 : vector<128x128xf32>
    %cst_14 = arith.constant 0.000000e+00 : f32
    %32 = vector.broadcast %cst_14 : f32 to vector<128x128xf32>
    %33 = arith.subf %32, %8 : vector<128x128xf32>
    %34 = math.exp %33 : vector<128x128xf32>
    %35 = arith.mulf %29, %34 : vector<128x128xf32>
    %36 = arith.mulf %35, %29 : vector<128x128xf32>
    %37 = arith.addf %31, %36 : vector<128x128xf32>
    %c0_15 = arith.constant 0 : index
    %c0_16 = arith.constant 0 : index
    %38 = vector.load %arg7[%c0_15, %c0_16] : memref<128x128xf32, #tpu.memory_space<vmem>>, vector<128x128xf32>
    %cst_17 = arith.constant dense<0.000000e+00> : vector<128x128xf32>
    %39 = tpu.matmul %37, %38, %cst_17 {dimension_numbers = #tpu.dot_dimension_numbers<[1], [0], [0], [1], [0, 0, 1, 1], [], []>} : vector<128x128xf32>, vector<128x128xf32>, vector<128x128xf32> -> vector<128x128xf32>
    %cst_18 = arith.constant -5.000000e-01 : f32
    %40 = vector.broadcast %cst_18 : f32 to vector<128x128xf32>
    %41 = arith.mulf %40, %39 : vector<128x128xf32>
    %42 = arith.addf %41, %25 : vector<128x128xf32>
    %43 = tpu.transpose %42, [1, 0] : vector<128x128xf32> -> vector<128x128xf32>
    %cst_19 = arith.constant dense<0xFF800000> : vector<128xf32>
    %44 = vector.multi_reduction <maximumf>, %43, %cst_19 [0] : vector<128x128xf32> to vector<128xf32>
    %45 = vector.shape_cast %44 : vector<128xf32> to vector<1x128xf32>
    %46 = vector.broadcast %45 : vector<1x128xf32> to vector<128x128xf32>
    %47 = arith.subf %43, %46 : vector<128x128xf32>
    %48 = math.exp %47 : vector<128x128xf32>
    %cst_20 = arith.constant dense<0.000000e+00> : vector<128xf32>
    %49 = vector.multi_reduction <add>, %48, %cst_20 [0] : vector<128x128xf32> to vector<128xf32>
    %50 = vector.shape_cast %49 : vector<128xf32> to vector<1x128xf32>
    %51 = math.log %50 : vector<1x128xf32>
    %52 = arith.addf %45, %51 : vector<1x128xf32>
    %c0_21 = arith.constant 0 : index
    %c0_22 = arith.constant 0 : index
    %c0_23 = arith.constant 0 : index
    %53 = vector.load %arg3[%c0_21, %c0_22, %c0_23] : memref<1x1x128xf32, #tpu.memory_space<vmem>>, vector<1x1x128xf32>
    %54 = vector.shape_cast %53 : vector<1x1x128xf32> to vector<1x128xf32>
    %55 = arith.mulf %52, %54 : vector<1x128xf32>
    %cst_24 = arith.constant 0.000000e+00 : f32
    %56 = vector.broadcast %cst_24 : f32 to vector<1x128xf32>
    %57 = arith.subf %56, %55 : vector<1x128xf32>
    %c0_25 = arith.constant 0 : index
    %c0_26 = arith.constant 0 : index
    %c0_27 = arith.constant 0 : index
    %58 = vector.load %arg8[%c0_25, %c0_26, %c0_27] : memref<1x1x128xf32, #tpu.memory_space<vmem>>, vector<1x1x128xf32>
    %59 = vector.shape_cast %58 : vector<1x1x128xf32> to vector<1x128xf32>
    %60 = vector.shape_cast %57 : vector<1x128xf32> to vector<1x1x128xf32>
    tpu.vector_store %arg8[%c0_25, %c0_26, %c0_27], %60 {strides = array<i32>} : memref<1x1x128xf32, #tpu.memory_space<vmem>>, vector<1x1x128xf32>,
    return
  }
  func.func @transform_0(%arg0: i32) -> (i32, i32) {
    %c0_i32 = arith.constant 0 : i32
    %c0_i32_0 = arith.constant 0 : i32
    return %arg0, %c0_i32 : i32, i32
  }
  func.func @transform_1(%arg0: i32) -> (i32, i32) {
    %c0_i32 = arith.constant 0 : i32
    %c0_i32_0 = arith.constant 0 : i32
    return %arg0, %c0_i32 : i32, i32
  }
  func.func @transform_2(%arg0: i32) -> (i32, i32, i32) {
    %c0_i32 = arith.constant 0 : i32
    %c0_i32_0 = arith.constant 0 : i32
    %c0_i32_1 = arith.constant 0 : i32
    return %arg0, %c0_i32, %c0_i32_0 : i32, i32, i32
  }
  func.func @transform_3(%arg0: i32) -> (i32, i32) {
    %c0_i32 = arith.constant 0 : i32
    %c0_i32_0 = arith.constant 0 : i32
    %c0_i32_1 = arith.constant 0 : i32
    return %c0_i32, %c0_i32_0 : i32, i32
  }
  func.func @transform_4(%arg0: i32) -> (i32, i32) {
    %c0_i32 = arith.constant 0 : i32
    %c0_i32_0 = arith.constant 0 : i32
    %c0_i32_1 = arith.constant 0 : i32
    return %c0_i32, %c0_i32_0 : i32, i32
  }
  func.func @transform_5(%arg0: i32) -> (i32, i32) {
    %c0_i32 = arith.constant 0 : i32
    %c0_i32_0 = arith.constant 0 : i32
    %c0_i32_1 = arith.constant 0 : i32
    return %c0_i32, %c0_i32_0 : i32, i32
  }
  func.func @transform_6(%arg0: i32) -> (i32, i32) {
    %c0_i32 = arith.constant 0 : i32
    %c0_i32_0 = arith.constant 0 : i32
    %c0_i32_1 = arith.constant 0 : i32
    return %c0_i32, %c0_i32_0 : i32, i32
  }
  func.func @transform_7(%arg0: i32) -> (i32, i32, i32) {
    %c0_i32 = arith.constant 0 : i32
    %c0_i32_0 = arith.constant 0 : i32
    %c0_i32_1 = arith.constant 0 : i32
    return %arg0, %c0_i32, %c0_i32_0 : i32, i32, i32
  }
}

</mosaic_0001>

<bundles_post_ra>
// kernel: tpu_custom_call.1
= control target key start
LH: loop header
LB: loop body
LE: loop exit
PB: predicated region body
PF: predicated region fallthrough
CT: control target
= control target key end

     0   :  { %v1728_v7 = vmov 0.0   ;;  %vm72_vm0 = vcmask 261120   ;;  %s2469_s0 = inlined_call_operand.vmem [shape: f32[128,32], index: 0, kind: input, shape index: {}]   ;;  %s2470_s1 = inlined_call_operand.vmem [shape: f32[128,16], index: 1, kind: input, shape index: {}]   ;;  %s2471_s2 = inlined_call_operand.vmem [shape: f32[1,1,128], index: 2, kind: input, shape index: {}]   ;;  %s2472_s3 = inlined_call_operand.vmem [shape: f32[32,384], index: 3, kind: input, shape index: {}]   ;;  %s2473_s4 = inlined_call_operand.vmem [shape: f32[1,384], index: 4, kind: input, shape index: {}]   ;;  %s2474_s5 = inlined_call_operand.vmem [shape: f32[16,128], index: 5, kind: input, shape index: {}]   ;;  %s2475_s6 = inlined_call_operand.vmem [shape: f32[128,128], index: 6, kind: input, shape index: {}]   ;;  %s2476_s7 = inlined_call_operand.hbm [shape: f32[1,1,128], index: 7, kind: output, shape index: {}]  }
   0x1   :  { %v44_v0 = vld [vmem:[%s2472_s3 + $0x8] sm:$0xff]  ;;  %v47_v1 = vld [vmem:[%s2472_s3 + $0x20] sm:$0xff]  ;;  %v46_v4 = vld [vmem:[%s2472_s3 + $0x18] sm:$0xff]  ;;  %185 = vmatprep.mubr.f32.mxu0 %v1728_v7  ;;  %257 = vmatprep.mubr.f32.mxu1 %v1728_v7 }
   0x2   :  { %v43_v2 = vld [vmem:[%s2472_s3] sm:$0xff]  ;;  %v1516_v3 = vpack.c.bf16 %v47_v1, %v44_v0  ;;  %v50_v5 = vld [vmem:[%s2472_s3 + $0x38] sm:$0xff]  ;;  %v53_v6 = vld [vmem:[%s2472_s3 + $0x50] sm:$0xff] }
   0x3   :  { %v1518_v8 = vpack.c.bf16 %v46_v4, %v43_v2  ;;  %v1520_v9 = vpack.c.bf16 %v53_v6, %v50_v5  ;;  %v49_v10 = vld [vmem:[%s2472_s3 + $0x30] sm:$0xff]  ;;  %v52_v11 = vld [vmem:[%s2472_s3 + $0x48] sm:$0xff]  ;;  %v51_v16 = vld [vmem:[%s2472_s3 + $0x40] sm:$0xff] }
   0x4   :  { %1517 = vmatprep.subr.bf16.mxu0 %v1516_v3  ;;  %1568 = vmatprep.subr.bf16.mxu1 %v1516_v3  ;;  %v1522_v12 = vpack.c.bf16 %v52_v11, %v49_v10  ;;  %v45_v13 = vld [vmem:[%s2472_s3 + $0x10] sm:$0xff]  ;;  %v48_v14 = vld [vmem:[%s2472_s3 + $0x28] sm:$0xff]  ;;  %v54_v17 = vld [vmem:[%s2472_s3 + $0x58] sm:$0xff] }
   0x5   :  { %1519 = vmatpush1.bf16.msra.mxu0 %v1518_v8  ;;  %1570 = vmatpush1.bf16.msra.mxu1 %v1518_v8  ;;  %v1524_v15 = vpack.c.bf16 %v48_v14, %v45_v13  ;;  %v27_v18 = vld [vmem:[%s2469_s0] sm:$0xff]  ;;  %v1528_v20 = vpack.c.bf16 %v54_v17, %v51_v16  ;;  %v623_v22 = vld [vmem:[%s2474_s5 + $0x8] sm:$0xff] }
   0x6   :  { %1521 = vmatprep.subr.bf16.mxu0 %v1520_v9  ;;  %1569 = vmatprep.subr.bf16.mxu1 %v1520_v9  ;;  %v1814_v19 = vld [vmem:[%s2469_s0 + $0x60] sm:$0xff]  ;;  %v28_v23 = vld [vmem:[%s2469_s0 + $0x8] sm:$0xff] }
   0x7   :  { %v622_v21 = vld [vmem:[%s2474_s5] sm:$0xff]  ;;  %v40_v24 = vld [vmem:[%s2469_s0 + $0x68] sm:$0xff] }
   0x8   :  { %v1532_v25 = vpack.c.bf16 %v623_v22, %v622_v21 }
   0x9   :  { %1523 = vmatpush1.bf16.msra.mxu0 %v1522_v12  ;;  %1571 = vmatpush1.bf16.msra.mxu1 %v1522_v12 }
   0xa   :  { %1525 = vmatprep.subr.bf16.mxu1 %v1524_v15 }
   0xc   :  { %1282 = vmatmul.mubr.msk.f32.vlgmr.msra.gmra.mrb[0].mxu0 %vm72_vm0, %v27_v18  ;;  %1294 = vmatmul.mubr.msk.f32.vlgmr.msra.gmra.mrb[0].mxu1 %vm72_vm0, %v1814_v19 }
   0xd   :  { %191 = vmatprep.mubr.f32.mxu0 %v1728_v7  ;;  %263 = vmatprep.mubr.f32.mxu1 %v1728_v7 }
   0xe   :  { %1527 = vmatpush3.bf16.msra.mxu1 %v1524_v15 }
   0xf   :  { %1529 = vmatprep.subr.bf16.mxu1 %v1528_v20 }
  0x10   :  { %1283 = vmatmul.mubr.msk.f32.gmra.mrb[2].mxu0 %vm72_vm0, %v28_v23  ;;  %1295 = vmatmul.mubr.msk.f32.gmra.mrb[2].mxu1 %vm72_vm0, %v40_v24 }
  0x11   :  { %12 = vsyncpa [#allocation3], 0  ;;  %197 = vmatprep.mubr.f32.mxu0 %v1728_v7  ;;  %269 = vmatprep.mubr.f32.mxu1 %v1728_v7  ;;  %v29_v26 = vld [vmem:[%s2469_s0 + $0x10] sm:$0xff]  ;;  %v30_v28 = vld [vmem:[%s2469_s0 + $0x18] sm:$0xff]  ;;  %vm624_vm1 = vcmask 130048   ;;  %v57_v14 = vlaneseq  ;;  %s1729_s23 = smov [#allocation2]  }
  0x12   :  { %v41_v27 = vld [vmem:[%s2469_s0 + $0x70] sm:$0xff]  ;;  %1531 = vmatpush3.bf16.msra.mxu1 %v1528_v20  ;;  %v42_v29 = vld [vmem:[%s2469_s0 + $0x78] sm:$0xff]  ;;  %v31_v30 = vld [vmem:[%s2469_s0 + $0x20] sm:$0xff] }
  0x13   :  { %1533 = vmatprep.subr.bf16.mxu1 %v1532_v25  ;;  %v32_v31 = vld [vmem:[%s2469_s0 + $0x28] sm:$0xff]  ;;  %v33_v32 = vld [vmem:[%s2469_s0 + $0x30] sm:$0xff]  ;;  %v34_v33 = vld [vmem:[%s2469_s0 + $0x38] sm:$0xff]  ;;  %v2024_v15 = vshrl.u32 %v57_v14, 7 }
  0x14   :  { %1284 = vmatmul.mubr.msk.f32.gmra.mrb[4].mxu0 %vm72_vm0, %v29_v26  ;;  %1296 = vmatmul.mubr.msk.f32.gmra.mrb[4].mxu1 %vm72_vm0, %v41_v27  ;;  %v35_v34 = vld [vmem:[%s2469_s0 + $0x40] sm:$0xff]  ;;  %v36_v35 = vld [vmem:[%s2469_s0 + $0x48] sm:$0xff]  ;;  %v37_v36 = vld [vmem:[%s2469_s0 + $0x50] sm:$0xff] }
  0x15   :  { %203 = vmatprep.mubr.f32.mxu0 %v1728_v7  ;;  %275 = vmatprep.mubr.f32.mxu1 %v1728_v7  ;;  %v38_v37 = vld [vmem:[%s2469_s0 + $0x58] sm:$0xff]  ;;  %v606_v38 = vld [vmem:[%s2470_s1] sm:$0xff]  ;;  %v607_v39 = vld [vmem:[%s2470_s1 + $0x8] sm:$0xff]  ;;  %v59_v16 = vsub.s32 0, %v2024_v15 }
  0x16   :  { %v608_v40 = vld [vmem:[%s2470_s1 + $0x10] sm:$0xff]  ;;  %v609_v41 = vld [vmem:[%s2470_s1 + $0x18] sm:$0xff]  ;;  %v610_v42 = vld [vmem:[%s2470_s1 + $0x20] sm:$0xff] }
  0x17   :  { %v611_v43 = vld [vmem:[%s2470_s1 + $0x28] sm:$0xff]  ;;  %v612_v44 = vld [vmem:[%s2470_s1 + $0x30] sm:$0xff]  ;;  %v613_v45 = vld [vmem:[%s2470_s1 + $0x38] sm:$0xff] }
  0x18   :  { %1285 = vmatmul.mubr.msk.f32.gmra.mrb[6].mxu0 %vm72_vm0, %v30_v28  ;;  %1297 = vmatmul.mubr.msk.f32.gmra.mrb[6].mxu1 %vm72_vm0, %v42_v29  ;;  %v614_v46 = vld [vmem:[%s2470_s1 + $0x40] sm:$0xff]  ;;  %v615_v47 = vld [vmem:[%s2470_s1 + $0x48] sm:$0xff]  ;;  %v616_v48 = vld [vmem:[%s2470_s1 + $0x50] sm:$0xff] }
  0x19   :  { %209 = vmatprep.mubr.f32.mxu0 %v1728_v7  ;;  %1408 = vmatprep.mubr.msk.f32.mxu1 %vm72_vm0, %v27_v18  ;;  %v617_v49 = vld [vmem:[%s2470_s1 + $0x58] sm:$0xff]  ;;  %v618_v50 = vld [vmem:[%s2470_s1 + $0x60] sm:$0xff]  ;;  %v619_v51 = vld [vmem:[%s2470_s1 + $0x68] sm:$0xff]  ;;  %v2032_v18 = vand.u32 127, %v57_v14 }
  0x1a   :  { %v620_v52 = vld [vmem:[%s2470_s1 + $0x70] sm:$0xff]  ;;  %v621_v53 = vld [vmem:[%s2470_s1 + $0x78] sm:$0xff]  ;;  %v946_v54 = vld [vmem:[%s2475_s6] sm:$0xff]  ;;  %s1274_s1 = sshll.u32 %s1729_s23, 4  ;;  %s1275_s1 = int_to_ptr.vmem [resolvable:$true] %s1274_s1 }
  0x1b   :  { %v947_v55 = vld [vmem:[%s2475_s6 + $0x8] sm:$0xff]  ;;  %v948_v57 = vld [vmem:[%s2475_s6 + $0x10] sm:$0xff]  ;;  %v949_v58 = vld [vmem:[%s2475_s6 + $0x18] sm:$0xff]  ;;  %vm429_vm2 = vcmp.lt.s32.totalorder %v2032_v18, 4  ;;  %s1704_s24 = scalar_lea.vmem %s1275_s1, 16  ;;  %s1708_s25 = scalar_lea.vmem %s1275_s1, 32 }
  0x1c   :  { %1286 = vmatmul.mubr.msk.f32.gmra.mrb[8].mxu0 %vm72_vm0, %v31_v30  ;;  %1409 = vmatmul.mubr.msk.f32.vlgmr.msra.gmra.mrb[8].mxu1 %vm72_vm0, %v28_v23  ;;  %v1536_v56 = vpack.c.bf16 %v947_v55, %v946_v54  ;;  %v1540_v59 = vpack.c.bf16 %v949_v58, %v948_v57  ;;  %v950_v60 = vld [vmem:[%s2475_s6 + $0x20] sm:$0xff]  ;;  %v951_v61 = vld [vmem:[%s2475_s6 + $0x28] sm:$0xff]  ;;  %v952_v63 = vld [vmem:[%s2475_s6 + $0x30] sm:$0xff]  ;;  %p1705_p0 = scmp.ne.s32.totalorder %s1275_s1, %s1704_s24  ;;  %p1709_p1 = scmp.lt.s32.totalorder %s1275_s1, %s1275_s1 }
  0x1d   :  { %215 = vmatprep.mubr.f32.mxu0 %v1728_v7  ;;  %1411 = vmatprep.mubr.msk.f32.mxu1 %vm72_vm0, %v29_v26  ;;  %v1544_v62 = vpack.c.bf16 %v951_v61, %v950_v60  ;;  %v953_v0 = vld [vmem:[%s2475_s6 + $0x38] sm:$0xff]  ;;  %v954_v2 = vld [vmem:[%s2475_s6 + $0x40] sm:$0xff]  ;;  %v955_v3 = vld [vmem:[%s2475_s6 + $0x48] sm:$0xff]  ;;  %p1710_p2 = scmp.lt.s32.totalorder %s1708_s25, %s1704_s24 }
  0x1e   :  { %1535 = vmatpush3.bf16.msra.mxu1 %v1532_v25  ;;  %1537 = vmatprep.subr.bf16.mxu0 %v1536_v56  ;;  %v1548_v1 = vpack.c.bf16 %v953_v0, %v952_v63  ;;  %v1552_v4 = vpack.c.bf16 %v955_v3, %v954_v2  ;;  %v956_v5 = vld [vmem:[%s2475_s6 + $0x50] sm:$0xff]  ;;  %v957_v6 = vld [vmem:[%s2475_s6 + $0x58] sm:$0xff]  ;;  %v958_v8 = vld [vmem:[%s2475_s6 + $0x60] sm:$0xff] }
  0x1f   :  { %1539 = vmatpush3.bf16.msra.mxu0 %v1536_v56  ;;  %v959_v9 = vld [vmem:[%s2475_s6 + $0x68] sm:$0xff]  ;;  %v960_v11 = vld [vmem:[%s2475_s6 + $0x70] sm:$0xff]  ;;  %v961_v12 = vld [vmem:[%s2475_s6 + $0x78] sm:$0xff]  ;;  %p1711_p3 = por %p1710_p2, %p1709_p1 }
  0x20   :  { %1287 = vmatmul.mubr.msk.f32.gmra.mrb[10].mxu0 %vm72_vm0, %v32_v31  ;;  %1412 = vmatmul.mubr.msk.f32.gmra.mrb[10].mxu1 %vm72_vm0, %v30_v28  ;;  %v1560_v10 = vpack.c.bf16 %v959_v9, %v958_v8  ;;  %v1564_v13 = vpack.c.bf16 %v961_v12, %v960_v11  ;;  %v2030_v17 = vld [vmem:[%s2473_s4] sm:$0x7]  ;;  %v63_v12 = vsub.s32 1, %v2024_v15 }
  0x21   :  { %221 = vmatprep.mubr.f32.mxu0 %v1728_v7  ;;  %1414 = vmatprep.mubr.msk.f32.mxu1 %vm72_vm0, %v31_v30  ;;  %p1712_p4 = pnand %p1711_p3, %p1705_p0 }
  0x22   :  { %1541 = vmatprep.subr.bf16.mxu0 %v1540_v59 }
  0x23   :  { %1543 = vmatpush3.bf16.msra.mxu0 %v1540_v59 }
  0x24   :  { %1288 = vmatmul.mubr.msk.f32.gmra.mrb[12].mxu0 %vm72_vm0, %v33_v32  ;;  %1415 = vmatmul.mubr.msk.f32.gmra.mrb[12].mxu1 %vm72_vm0, %v32_v31 }
  0x25   :  { %227 = vmatprep.mubr.f32.mxu0 %v1728_v7  ;;  %1417 = vmatprep.mubr.msk.f32.mxu1 %vm72_vm0, %v33_v32 }
  0x26   :  { %1545 = vmatprep.subr.bf16.mxu0 %v1544_v62 }
  0x27   :  { %1547 = vmatpush3.bf16.msra.mxu0 %v1544_v62 }
  0x28   :  { %1289 = vmatmul.mubr.msk.f32.gmra.mrb[14].mxu0 %vm72_vm0, %v34_v33  ;;  %1418 = vmatmul.mubr.msk.f32.gmra.mrb[14].mxu1 %vm72_vm0, %v34_v33 }
  0x29   :  { %233 = vmatprep.mubr.f32.mxu0 %v1728_v7  ;;  %1420 = vmatprep.mubr.msk.f32.mxu1 %vm72_vm0, %v35_v34 }
  0x2a   :  { %1549 = vmatprep.subr.bf16.mxu0 %v1548_v1 }
  0x2b   :  { %1551 = vmatpush3.bf16.msra.mxu0 %v1548_v1 }
  0x2c   :  { %1290 = vmatmul.mubr.msk.f32.gmra.mrb[16].mxu0 %vm72_vm0, %v35_v34  ;;  %1421 = vmatmul.mubr.msk.f32.gmra.mrb[16].mxu1 %vm72_vm0, %v36_v35 }
  0x2d   :  { %239 = vmatprep.mubr.f32.mxu0 %v1728_v7  ;;  %1423 = vmatprep.mubr.msk.f32.mxu1 %vm72_vm0, %v37_v36 }
  0x2e   :  { %1553 = vmatprep.subr.bf16.mxu0 %v1552_v4 }
  0x2f   :  { %1555 = vmatpush3.bf16.msra.mxu0 %v1552_v4 }
  0x30   :  { %1291 = vmatmul.mubr.msk.f32.gmra.mrb[18].mxu0 %vm72_vm0, %v36_v35  ;;  %1424 = vmatmul.mubr.msk.f32.gmra.mrb[18].mxu1 %vm72_vm0, %v38_v37 }
  0x31   :  { %245 = vmatprep.mubr.f32.mxu0 %v1728_v7  ;;  %1426 = vmatprep.mubr.msk.f32.mxu1 %vm72_vm0, %v1814_v19  ;;  %v2035_v19 = vrot.slane %v2030_v17, %v59_v16 }
  0x34   :  { %1292 = vmatmul.mubr.msk.f32.gmra.mrb[20].mxu0 %vm72_vm0, %v37_v36  ;;  %1427 = vmatmul.mubr.msk.f32.gmra.mrb[20].mxu1 %vm72_vm0, %v40_v24 }
  0x35   :  { %251 = vmatprep.mubr.f32.mxu0 %v1728_v7  ;;  %1429 = vmatprep.mubr.msk.f32.mxu1 %vm72_vm0, %v41_v27  ;;  %v1556_v7 = vpack.c.bf16 %v957_v6, %v956_v5 }
  0x37   :  { %1557 = vmatprep.subr.bf16.mxu0 %v1556_v7 }
  0x38   :  { %1293 = vmatmul.mubr.msk.f32.gmra.mrb[22].mxu0 %vm72_vm0, %v38_v37  ;;  %1430 = vmatmul.mubr.msk.f32.gmra.mrb[22].mxu1 %vm72_vm0, %v42_v29 }
  0x39   :  { %1436 = vmatprep.mubr.msk.f32.mxu1 %vm624_vm1, %v606_v38  ;;  %1559 = vmatpush3.bf16.msra.mxu0 %v1556_v7 }
  0x3a   :  { %1561 = vmatprep.subr.bf16.mxu0 %v1560_v10 }
  0x3c   :  { %1437 = vmatmul.mubr.msk.f32.vlgmr.msra.gmra.mrb[24].mxu1 %vm624_vm1, %v607_v39 }
  0x3d   :  { %1439 = vmatprep.mubr.msk.f32.mxu1 %vm624_vm1, %v608_v40  ;;  %1563 = vmatpush3.bf16.msra.mxu0 %v1560_v10 }
  0x3e   :  { %1565 = vmatprep.subr.bf16.mxu0 %v1564_v13 }
  0x40   :  { %1440 = vmatmul.mubr.msk.f32.gmra.mrb[26].mxu1 %vm624_vm1, %v609_v41 }
  0x41   :  { %1442 = vmatprep.mubr.msk.f32.mxu1 %vm624_vm1, %v610_v42  ;;  %1567 = vmatpush3.bf16.msra.mxu0 %v1564_v13 }
  0x44   :  { %1443 = vmatmul.mubr.msk.f32.gmra.mrb[28].mxu1 %vm624_vm1, %v611_v43 }
  0x45   :  { %1445 = vmatprep.mubr.msk.f32.mxu1 %vm624_vm1, %v612_v44 }
  0x48   :  { %1446 = vmatmul.mubr.msk.f32.gmra.mrb[30].mxu1 %vm624_vm1, %v613_v45 }
  0x49   :  { %1448 = vmatprep.mubr.msk.f32.mxu1 %vm624_vm1, %v614_v46 }
  0x4c   :  { %1449 = vmatmul.mubr.msk.f32.gmra.mrb[32].mxu1 %vm624_vm1, %v615_v47 }
  0x4d   :  { %1451 = vmatprep.mubr.msk.f32.mxu1 %vm624_vm1, %v616_v48  ;;  %v67_v48 = vsub.s32 2, %v2024_v15 }
  0x4f   :  { %v2099_v55 = vrot.slane %v2030_v17, %v67_v48 }
  0x50   :  { %1452 = vmatmul.mubr.msk.f32.gmra.mrb[34].mxu1 %vm624_vm1, %v617_v49 }
  0x51   :  { %1454 = vmatprep.mubr.msk.f32.mxu1 %vm624_vm1, %v618_v50 }
  0x54   :  { %1455 = vmatmul.mubr.msk.f32.gmra.mrb[36].mxu1 %vm624_vm1, %v619_v51 }
  0x55   :  { %1457 = vmatprep.mubr.msk.f32.mxu1 %vm624_vm1, %v620_v52 }
  0x58   :  { %1458 = vmatmul.mubr.msk.f32.gmra.mrb[38].mxu1 %vm624_vm1, %v621_v53 }
  0xdf   :  { %v187_v20 = vpop.f32.mrb[0].mxu0  ;;  %v2038_v21 = vpop.f32.mrb[0].mxu1 }
  0xe0   :  { %v188_v22 = vadd.f32 %v187_v20, %v2035_v19  ;;  %v2041_v23 = vpop.f32.mrb[1].mxu0  ;;  %v2043_v24 = vpop.f32.mrb[1].mxu1  ;;  %v260_v48 = vadd.f32 %v2038_v21, %v2035_v19 }
  0xe2   :  { %v2047_v25 = vsel %vm429_vm2, %v188_v22, -1e+30 }
  0xe3   :  { %v193_v26 = vpop.f32.mrb[2].mxu0  ;;  %446 = vmax.xlane.f32.xlu0 %v2047_v25  ;;  %v2050_v27 = vpop.f32.mrb[2].mxu1 }
  0xe4   :  { %v194_v28 = vadd.f32 %v193_v26, %v2035_v19  ;;  %v2053_v29 = vpop.f32.mrb[3].mxu0  ;;  %v2055_v30 = vpop.f32.mrb[3].mxu1 }
  0xe6   :  { %v2059_v31 = vsel %vm429_vm2, %v194_v28, -1e+30 }
  0xe7   :  { %v199_v32 = vpop.f32.mrb[4].mxu0  ;;  %448 = vmax.xlane.f32.xlu0 %v2059_v31  ;;  %v2062_v33 = vpop.f32.mrb[4].mxu1 }
  0xe8   :  { %v200_v34 = vadd.f32 %v199_v32, %v2035_v19  ;;  %v2065_v35 = vpop.f32.mrb[5].mxu0  ;;  %v2067_v36 = vpop.f32.mrb[5].mxu1 }
  0xea   :  { %v2071_v37 = vsel %vm429_vm2, %v200_v34, -1e+30 }
  0xeb   :  { %2484 = vst [vmem:[#allocation5_spill] sm:$0xff] %v2071_v37  ;;  %v205_v38 = vpop.f32.mrb[6].mxu0  ;;  %450 = vmax.xlane.f32.xlu1 %v2071_v37  ;;  %v2074_v39 = vpop.f32.mrb[6].mxu1 }
  0xec   :  { %v206_v40 = vadd.f32 %v205_v38, %v2035_v19  ;;  %v2077_v41 = vpop.f32.mrb[7].mxu0  ;;  %v2079_v42 = vpop.f32.mrb[7].mxu1 }
  0xee   :  { %v2083_v43 = vsel %vm429_vm2, %v206_v40, -1e+30 }
  0xef   :  { %v211_v44 = vpop.f32.mrb[8].mxu0  ;;  %452 = vmax.xlane.f32.xlu1 %v2083_v43  ;;  %v1410_v45 = vpop.f32.mrb[8].mxu1 }
  0xf0   :  { %v212_v46 = vadd.f32 %v211_v44, %v2035_v19  ;;  %v2087_v47 = vpop.f32.mrb[9].mxu0  ;;  %v348_v49 = vpop.f32.mrb[9].mxu1  ;;  %v2110_v62 = vadd.f32 %v1410_v45, %v2099_v55  ;;  %v2153_v44 = vrot.slane %v2030_v17, %v63_v12 }
  0xf1   :  { %v2113_v0 = vadd.f32 %v348_v49, %v2099_v55 }
  0xf2   :  { %v2092_v50 = vsel %vm429_vm2, %v212_v46, -1e+30  ;;  %v851_v6 = vsub.f32 0.0, %v2110_v62 }
  0xf3   :  { %2485 = vst [vmem:[#allocation6_spill] sm:$0xff] %v2092_v50  ;;  %v217_v51 = vpop.f32.mrb[10].mxu0  ;;  %454 = vmax.xlane.f32.xlu0 %v2092_v50  ;;  %v1413_v52 = vpop.f32.mrb[10].mxu1  ;;  %v850_v8 = vsub.f32 0.0, %v2113_v0 }
  0xf4   :  { %v218_v53 = vadd.f32 %v217_v51, %v2035_v19  ;;  %v2096_v54 = vpop.f32.mrb[11].mxu0  ;;  %v358_v56 = vpop.f32.mrb[11].mxu1  ;;  %v2126_v9 = vadd.f32 %v1413_v52, %v2099_v55  ;;  %v868_v20 = vmul.f32 1.442695, %v851_v6 }
  0xf5   :  { %v2133_v11 = vadd.f32 %v358_v56, %v2099_v55  ;;  %v866_v28 = vmul.f32 1.442695, %v850_v8 }
  0xf6   :  { %v2103_v57 = vsel %vm429_vm2, %v218_v53, -1e+30  ;;  %v853_v32 = vsub.f32 0.0, %v2126_v9  ;;  %1574 = vpow2.f32 %v868_v20 }
  0xf7   :  { %v223_v58 = vpop.f32.mrb[12].mxu0  ;;  %456 = vmax.xlane.f32.xlu1 %v2103_v57  ;;  %v1416_v59 = vpop.f32.mrb[12].mxu1  ;;  %v852_v38 = vsub.f32 0.0, %v2133_v11  ;;  %1576 = vpow2.f32 %v866_v28  ;;  %v836_v37 = vadd.f32 1.837877, %v2133_v11 }
  0xf8   :  { %v224_v60 = vadd.f32 %v223_v58, %v2035_v19  ;;  %v2107_v61 = vpop.f32.mrb[13].mxu0  ;;  %v368_v63 = vpop.f32.mrb[13].mxu1  ;;  %v2142_v34 = vadd.f32 %v1416_v59, %v2099_v55  ;;  %v872_v53 = vmul.f32 1.442695, %v853_v32  ;;  %v196_v32 = vadd.f32 %v2053_v29, %v2153_v44 }
  0xf9   :  { %v2150_v40 = vadd.f32 %v368_v63, %v2099_v55  ;;  %v870_v58 = vmul.f32 1.442695, %v852_v38  ;;  %v190_v63 = vadd.f32 %v2041_v23, %v2153_v44 }
  0xfa   :  { %v2117_v1 = vsel %vm429_vm2, %v224_v60, -1e+30  ;;  %v855_v56 = vsub.f32 0.0, %v2142_v34  ;;  %1578 = vpow2.f32 %v872_v53  ;;  %v202_v53 = vadd.f32 %v2065_v35, %v2153_v44 }
  0xfb   :  { %2486 = vst [vmem:[#allocation7_spill] sm:$0xff] %v2117_v1  ;;  %v229_v2 = vpop.f32.mrb[14].mxu0  ;;  %458 = vmax.xlane.f32.xlu0 %v2117_v1  ;;  %v1419_v3 = vpop.f32.mrb[14].mxu1  ;;  %v854_v59 = vsub.f32 0.0, %v2150_v40  ;;  %1580 = vpow2.f32 %v870_v58  ;;  %v837_v1 = vadd.f32 1.837877, %v2126_v9 }
  0xfc   :  { %v230_v4 = vadd.f32 %v229_v2, %v2035_v19  ;;  %v2121_v5 = vpop.f32.mrb[15].mxu0  ;;  %v378_v7 = vpop.f32.mrb[15].mxu1  ;;  %v2163_v17 = vadd.f32 %v1419_v3, %v2099_v55  ;;  %v266_v2 = vadd.f32 %v2050_v27, %v2035_v19  ;;  %v2191_v27 = vsel %vm429_vm2, %v260_v48, -1e+30 }
  0xfd   :  { %v2167_v60 = vadd.f32 %v378_v7, %v2099_v55  ;;  %v272_v7 = vadd.f32 %v2062_v33, %v2035_v19  ;;  %2488 = vst [vmem:[#allocation9_spill] sm:$0xff] %v2191_v27  ;;  %v874_v33 = vmul.f32 1.442695, %v854_v59 }
  0xfe   :  { %v2130_v10 = vsel %vm429_vm2, %v230_v4, -1e+30  ;;  %v857_v20 = vsub.f32 0.0, %v2163_v17 }
  0xff   :  { %v235_v13 = vpop.f32.mrb[16].mxu0  ;;  %460 = vmax.xlane.f32.xlu1 %v2130_v10  ;;  %v1422_v14 = vpop.f32.mrb[16].mxu1  ;;  %v856_v28 = vsub.f32 0.0, %v2167_v60 }
 0x100   :  { %v236_v16 = vadd.f32 %v235_v13, %v2035_v19  ;;  %v2138_v22 = vpop.f32.mrb[17].mxu0  ;;  %v388_v26 = vpop.f32.mrb[17].mxu1  ;;  %v2178_v3 = vadd.f32 %v1422_v14, %v2099_v55  ;;  %v278_v14 = vadd.f32 %v2074_v39, %v2035_v19 }
 0x101   :  { %v2187_v13 = vadd.f32 %v388_v26, %v2099_v55  ;;  %v1575_v35 = vpop.eup %1574 }
 0x102   :  { %v2147_v15 = vsel %vm429_vm2, %v236_v16, -1e+30  ;;  %v876_v16 = vmul.f32 1.442695, %v855_v56  ;;  %v859_v38 = vsub.f32 0.0, %v2178_v3 }
 0x103   :  { %2487 = vst [vmem:[#allocation8_spill] sm:$0xff] %v2147_v15  ;;  %v241_v45 = vpop.f32.mrb[18].mxu0  ;;  %462 = vmax.xlane.f32.xlu0 %v2147_v15  ;;  %v1425_v46 = vpop.f32.mrb[18].mxu1  ;;  %v858_v56 = vsub.f32 0.0, %v2187_v13 }
 0x104   :  { %v242_v49 = vadd.f32 %v241_v45, %v2035_v19  ;;  %v2159_v51 = vpop.f32.mrb[19].mxu0  ;;  %v398_v52 = vpop.f32.mrb[19].mxu1  ;;  %v2205_v45 = vadd.f32 %v1425_v46, %v2099_v55  ;;  %1582 = vpow2.f32 %v876_v16  ;;  %v835_v16 = vadd.f32 1.837877, %v2110_v62 }
 0x105   :  { %v2216_v29 = vadd.f32 %v398_v52, %v2099_v55  ;;  %1584 = vpow2.f32 %v874_v33  ;;  %v834_v33 = vadd.f32 1.837877, %v2113_v0 }
 0x106   :  { %v2171_v21 = vsel %vm429_vm2, %v242_v49, -1e+30  ;;  %v2210_v49 = vsel %vm429_vm2, %v266_v2, -1e+30  ;;  %v2225_v2 = vsel %vm429_vm2, %v272_v7, -1e+30 }
 0x107   :  { %v247_v4 = vpop.f32.mrb[20].mxu0  ;;  %464 = vmax.xlane.f32.xlu1 %v2171_v21  ;;  %v1428_v6 = vpop.f32.mrb[20].mxu1  ;;  %2490 = vst [vmem:[#allocation11_spill] sm:$0xff] %v2225_v2  ;;  %v861_v7 = vsub.f32 0.0, %v2205_v45  ;;  %v860_v18 = vsub.f32 0.0, %v2216_v29 }
 0x108   :  { %v248_v8 = vadd.f32 %v247_v4, %v2035_v19  ;;  %v2184_v12 = vpop.f32.mrb[21].mxu0  ;;  %v408_v23 = vpop.f32.mrb[21].mxu1  ;;  %v208_v4 = vadd.f32 %v2077_v41, %v2153_v44  ;;  %v214_v41 = vadd.f32 %v2087_v47, %v2153_v44  ;;  %v220_v47 = vadd.f32 %v2096_v54, %v2153_v44 }
 0x109   :  { %v2246_v62 = vadd.f32 %v1428_v6, %v2099_v55  ;;  %v2250_v50 = vadd.f32 %v408_v23, %v2099_v55 }
 0x10a   :  { %v2199_v26 = vsel %vm429_vm2, %v248_v8, -1e+30  ;;  %v880_v8 = vmul.f32 1.442695, %v857_v20  ;;  %v884_v20 = vmul.f32 1.442695, %v859_v38 }
 0x10b   :  { %2489 = vst [vmem:[#allocation10_spill] sm:$0xff] %v2199_v26  ;;  %v253_v39 = vpop.f32.mrb[22].mxu0  ;;  %466 = vmax.xlane.f32.xlu0 %v2199_v26  ;;  %v1431_v48 = vpop.f32.mrb[22].mxu1  ;;  %v878_v26 = vmul.f32 1.442695, %v856_v28  ;;  %v863_v23 = vsub.f32 0.0, %v2246_v62 }
 0x10c   :  { %v254_v58 = vadd.f32 %v253_v39, %v2035_v19  ;;  %v418_v46 = vpop.f32.mrb[23].mxu1  ;;  %v2219_v59 = vpop.f32.mrb[23].mxu0  ;;  %v2233_v19 = vsel %vm429_vm2, %v278_v14, -1e+30  ;;  %v882_v28 = vmul.f32 1.442695, %v858_v56  ;;  %1586 = vpow2.f32 %v880_v8 }
 0x10d   :  { %v1577_v39 = vpop.eup %1576  ;;  %1588 = vpow2.f32 %v878_v26  ;;  %v2257_v8 = vadd.f32 %v1431_v48, %v2099_v55 }
 0x10e   :  { %v2229_v52 = vsel %vm429_vm2, %v254_v58, -1e+30  ;;  %v1579_v56 = vpop.eup %1578  ;;  %1590 = vpow2.f32 %v884_v20  ;;  %v2261_v20 = vadd.f32 %v418_v46, %v2099_v55  ;;  %v892_v46 = vmul.f32 1.442695, %v863_v23 }
 0x10f   :  { %v1438_v15 = vpop.f32.mrb[24].mxu1  ;;  %468 = vmax.xlane.f32.xlu1 %v2229_v52  ;;  %470 = vmax.xlane.f32.xlu0 %v2191_v27  ;;  %v1581_v54 = vpop.eup %1580  ;;  %1592 = vpow2.f32 %v882_v28  ;;  %v839_v28 = vadd.f32 1.837877, %v2142_v34  ;;  %v841_v23 = vadd.f32 1.837877, %v2163_v17 }
 0x110   :  { %v819_v14 = vsub.f32 %v1438_v15, %v196_v32  ;;  %v739_v58 = vpop.f32.mrb[25].mxu1  ;;  %v888_v15 = vmul.f32 1.442695, %v861_v7  ;;  %v840_v17 = vadd.f32 1.837877, %v2167_v60 }
 0x111   :  { %v818_v38 = vsub.f32 %v739_v58, %v190_v63  ;;  %v886_v63 = vmul.f32 1.442695, %v860_v18 }
 0x112   :  { %v899_v0 = vmul.f32 %v1575_v35, %v819_v14  ;;  %1594 = vpow2.f32 %v888_v15  ;;  %v864_v15 = vsub.f32 0.0, %v2261_v20 }
 0x113   :  { %v898_v32 = vmul.f32 %v1577_v39, %v818_v38  ;;  %v1441_v27 = vpop.f32.mrb[26].mxu1  ;;  %472 = vmax.xlane.f32.xlu1 %v2210_v49  ;;  %474 = vmax.xlane.f32.xlu0 %v2225_v2  ;;  %v862_v39 = vsub.f32 0.0, %v2250_v50  ;;  %v1583_v2 = vpop.eup %1582  ;;  %1596 = vpow2.f32 %v886_v63  ;;  %v838_v63 = vadd.f32 1.837877, %v2150_v40 }
 0x114   :  { %v915_v9 = vmul.f32 %v899_v0, %v819_v14  ;;  %v821_v6 = vsub.f32 %v1441_v27, %v208_v4  ;;  %v749_v26 = vpop.f32.mrb[27].mxu1  ;;  %v1585_v48 = vpop.eup %1584  ;;  %1598 = vpow2.f32 %v892_v46  ;;  %v894_v40 = vmul.f32 1.442695, %v864_v15 }
 0x115   :  { %v914_v11 = vmul.f32 %v898_v32, %v818_v38  ;;  %v820_v35 = vsub.f32 %v749_v26, %v202_v53  ;;  %v232_v53 = vadd.f32 %v2121_v5, %v2153_v44  ;;  %v890_v34 = vmul.f32 1.442695, %v862_v39 }
 0x116   :  { %v931_v7 = vadd.f32 %v915_v9, %v835_v16  ;;  %v901_v58 = vmul.f32 %v1579_v56, %v821_v6  ;;  %v865_v16 = vsub.f32 0.0, %v2257_v8  ;;  %v226_v5 = vadd.f32 %v2107_v61, %v2153_v44 }
 0x117   :  { %v900_v27 = vmul.f32 %v1581_v54, %v820_v35  ;;  %v1444_v4 = vpop.f32.mrb[28].mxu1  ;;  %476 = vmax.xlane.f32.xlu1 %v2233_v19  ;;  %v930_v18 = vadd.f32 %v914_v11, %v834_v33  ;;  %v1587_v54 = vpop.eup %1586  ;;  %1600 = vpow2.f32 %v890_v34  ;;  %v250_v34 = vadd.f32 %v2184_v12, %v2153_v44 }
 0x118   :  { %v917_v14 = vmul.f32 %v901_v58, %v821_v6  ;;  %v823_v38 = vsub.f32 %v1444_v4, %v220_v47  ;;  %v759_v55 = vpop.f32.mrb[29].mxu1  ;;  %v1589_v26 = vpop.eup %1588  ;;  %v842_v15 = vadd.f32 1.837877, %v2187_v13  ;;  %v262_v13 = vadd.f32 %v2043_v24, %v2153_v44 }
 0x119   :  { %v916_v0 = vmul.f32 %v900_v27, %v820_v35  ;;  %v822_v56 = vsub.f32 %v759_v55, %v214_v41  ;;  %1492 = vmatprep.mubr.f32.mxu0 %v930_v18  ;;  %v244_v41 = vadd.f32 %v2159_v51, %v2153_v44  ;;  %v1591_v39 = vpop.eup %1590  ;;  %v238_v51 = vadd.f32 %v2138_v22, %v2153_v44 }
 0x11a   :  { %v903_v32 = vmul.f32 %v1583_v2, %v823_v38  ;;  %1493 = vmatmul.mubr.f32.vlgmr.msra.gmra.mrb[24].mxu0 %v931_v7  ;;  %v933_v33 = vadd.f32 %v917_v14, %v837_v1  ;;  %v896_v1 = vmul.f32 1.442695, %v865_v16  ;;  %v1593_v61 = vpop.eup %1592  ;;  %v256_v55 = vadd.f32 %v2219_v59, %v2153_v44 }
 0x11b   :  { %v902_v47 = vmul.f32 %v1585_v48, %v822_v56  ;;  %v1447_v9 = vpop.f32.mrb[30].mxu1  ;;  %v932_v6 = vadd.f32 %v916_v0, %v836_v37  ;;  %v847_v24 = vadd.f32 1.837877, %v2246_v62 }
 0x11c   :  { %v919_v11 = vmul.f32 %v903_v32, %v823_v38  ;;  %v825_v35 = vsub.f32 %v1447_v9, %v232_v53  ;;  %v769_v2 = vpop.f32.mrb[31].mxu1  ;;  %v1595_v46 = vpop.eup %1594  ;;  %1602 = vpow2.f32 %v896_v1 }
 0x11d   :  { %v918_v7 = vmul.f32 %v902_v47, %v822_v56  ;;  %v824_v58 = vsub.f32 %v769_v2, %v226_v5  ;;  %1495 = vmatprep.mubr.f32.mxu0 %v932_v6  ;;  %v843_v56 = vadd.f32 1.837877, %v2178_v3  ;;  %1604 = vpow2.f32 %v894_v40 }
 0x11e   :  { %v905_v27 = vmul.f32 %v1587_v54, %v825_v35  ;;  %1496 = vmatmul.mubr.f32.gmra.mrb[26].mxu0 %v933_v33  ;;  %v935_v37 = vadd.f32 %v919_v11, %v839_v28  ;;  %v1597_v28 = vpop.eup %1596  ;;  %v268_v54 = vadd.f32 %v2055_v30, %v2153_v44  ;;  %v845_v6 = vadd.f32 1.837877, %v2205_v45 }
 0x11f   :  { %v904_v4 = vmul.f32 %v1589_v26, %v824_v58  ;;  %v1450_v18 = vpop.f32.mrb[32].mxu1  ;;  %v934_v48 = vadd.f32 %v918_v7, %v838_v63  ;;  %v1599_v12 = vpop.eup %1598  ;;  %v274_v45 = vadd.f32 %v2067_v36, %v2153_v44 }
 0x120   :  { %v921_v53 = vmul.f32 %v905_v27, %v825_v35  ;;  %v827_v14 = vsub.f32 %v1450_v18, %v244_v41  ;;  %v779_v38 = vpop.f32.mrb[33].mxu1 }
 0x121   :  { %v920_v16 = vmul.f32 %v904_v4, %v824_v58  ;;  %v826_v0 = vsub.f32 %v779_v38, %v238_v51  ;;  %1498 = vmatprep.mubr.f32.mxu0 %v934_v48  ;;  %v1601_v2 = vpop.eup %1600  ;;  %v846_v51 = vadd.f32 1.837877, %v2250_v50 }
 0x122   :  { %v907_v22 = vmul.f32 %v1591_v39, %v827_v14  ;;  %1499 = vmatmul.mubr.f32.gmra.mrb[28].mxu0 %v935_v37  ;;  %v937_v60 = vadd.f32 %v921_v53, %v841_v23  ;;  %v844_v23 = vadd.f32 1.837877, %v2216_v29  ;;  %v280_v39 = vadd.f32 %v2079_v42, %v2153_v44 }
 0x123   :  { %v906_v32 = vmul.f32 %v1593_v61, %v826_v0  ;;  %v1453_v33 = vpop.f32.mrb[34].mxu1  ;;  %v936_v59 = vadd.f32 %v920_v16, %v840_v17  ;;  %v849_v44 = vadd.f32 1.837877, %v2257_v8 }
 0x124   :  { %v923_v5 = vmul.f32 %v907_v22, %v827_v14  ;;  %v789_v63 = vpop.f32.mrb[35].mxu1  ;;  %v829_v47 = vsub.f32 %v1453_v33, %v256_v55 }
 0x125   :  { %v922_v9 = vmul.f32 %v906_v32, %v826_v0  ;;  %v828_v3 = vsub.f32 %v789_v63, %v250_v34  ;;  %1501 = vmatprep.mubr.f32.mxu0 %v936_v59 }
 0x126   :  { %v909_v26 = vmul.f32 %v1595_v46, %v829_v47  ;;  %1502 = vmatmul.mubr.f32.gmra.mrb[30].mxu0 %v937_v60  ;;  %v939_v41 = vadd.f32 %v923_v5, %v843_v56  ;;  %v1603_v37 = vpop.eup %1602  ;;  %v848_v46 = vadd.f32 1.837877, %v2261_v20 }
 0x127   :  { %v908_v11 = vmul.f32 %v1597_v28, %v828_v3  ;;  %v1456_v35 = vpop.f32.mrb[36].mxu1  ;;  %v938_v30 = vadd.f32 %v922_v9, %v842_v15  ;;  %v1605_v18 = vpop.eup %1604 }
 0x128   :  { %v925_v1 = vmul.f32 %v909_v26, %v829_v47  ;;  %v831_v7 = vsub.f32 %v1456_v35, %v268_v54  ;;  %v799_v58 = vpop.f32.mrb[37].mxu1 }
 0x129   :  { %v924_v61 = vmul.f32 %v908_v11, %v828_v3  ;;  %v830_v40 = vsub.f32 %v799_v58, %v262_v13  ;;  %1504 = vmatprep.mubr.f32.mxu0 %v938_v30 }
 0x12a   :  { %v911_v27 = vmul.f32 %v1599_v12, %v831_v7  ;;  %1505 = vmatmul.mubr.f32.gmra.mrb[32].mxu0 %v939_v41  ;;  %v941_v29 = vadd.f32 %v925_v1, %v845_v6 }
 0x12b   :  { %v910_v17 = vmul.f32 %v1601_v2, %v830_v40  ;;  %v940_v4 = vadd.f32 %v924_v61, %v844_v23  ;;  %v1459_v42 = vpop.f32.mrb[38].mxu1 }
 0x12c   :  { %v927_v48 = vmul.f32 %v911_v27, %v831_v7  ;;  %v833_v53 = vsub.f32 %v1459_v42, %v280_v39  ;;  %v809_v14 = vpop.f32.mrb[39].mxu1  ;;  %v2491_v7 = vld [vmem:[#allocation9_spill] sm:$0xff] }
 0x12d   :  { %v926_v38 = vmul.f32 %v910_v17, %v830_v40  ;;  %1507 = vmatprep.mubr.f32.mxu0 %v940_v4  ;;  %v832_v36 = vsub.f32 %v809_v14, %v274_v45  ;;  %v2492_v45 = vld [vmem:[#allocation5_spill] sm:$0xff] }
 0x12e   :  { %1508 = vmatmul.mubr.f32.gmra.mrb[34].mxu0 %v941_v29  ;;  %v913_v62 = vmul.f32 %v1603_v37, %v833_v53  ;;  %v943_v55 = vadd.f32 %v927_v48, %v847_v24  ;;  %v2493_v37 = vld [vmem:[#allocation6_spill] sm:$0xff] }
 0x12f   :  { %v942_v16 = vadd.f32 %v926_v38, %v846_v51  ;;  %v912_v0 = vmul.f32 %v1605_v18, %v832_v36  ;;  %v2495_v38 = vld [vmem:[#allocation8_spill] sm:$0xff] }
 0x130   :  { %v929_v50 = vmul.f32 %v913_v62, %v833_v53 }
 0x131   :  { %1510 = vmatprep.mubr.f32.mxu0 %v942_v16  ;;  %v928_v28 = vmul.f32 %v912_v0, %v832_v36 }
 0x132   :  { %1511 = vmatmul.mubr.f32.gmra.mrb[36].mxu0 %v943_v55  ;;  %v945_v56 = vadd.f32 %v929_v50, %v849_v44  ;;  %v2496_v55 = vld [vmem:[#allocation10_spill] sm:$0xff] }
 0x133   :  { %v944_v22 = vadd.f32 %v928_v28, %v848_v46 }
 0x135   :  { %1513 = vmatprep.mubr.f32.mxu0 %v944_v22 }
 0x136   :  { %1514 = vmatmul.mubr.f32.gmra.mrb[38].mxu0 %v945_v56  ;;  %v2497_v56 = vld [vmem:[#allocation11_spill] sm:$0xff] }
 0x170   :  { %v447_v60 = vpop.xlane.xlu0 %446 }
 0x171   :  { %v2299_v34 = vsub.f32 %v2047_v25, %v447_v60 }
 0x173   :  { %v494_v8 = vmul.f32 1.442695, %v2299_v34 }
 0x174   :  { %v449_v15 = vpop.xlane.xlu0 %448 }
 0x175   :  { %1606 = vpow2.f32 %v494_v8  ;;  %v2303_v20 = vsub.f32 %v2059_v31, %v449_v15 }
 0x177   :  { %v496_v32 = vmul.f32 1.442695, %v2303_v20 }
 0x178   :  { %v451_v33 = vpop.xlane.xlu1 %450 }
 0x179   :  { %1608 = vpow2.f32 %v496_v32  ;;  %v2329_v61 = vsub.f32 %v2492_v45, %v451_v33 }
 0x17b   :  { %v498_v29 = vmul.f32 1.442695, %v2329_v61 }
 0x17c   :  { %v453_v59 = vpop.xlane.xlu1 %452 }
 0x17d   :  { %v2307_v54 = vsub.f32 %v2083_v43, %v453_v59 }
 0x17f   :  { %v1607_v5 = vpop.eup %1606  ;;  %v500_v63 = vmul.f32 1.442695, %v2307_v54 }
 0x180   :  { %526 = vadd.xlane.f32.xlu0 %v1607_v5  ;;  %v455_v6 = vpop.xlane.xlu0 %454 }
 0x181   :  { %1610 = vpow2.f32 %v500_v63 }
 0x183   :  { %v1609_v25 = vpop.eup %1608 }
 0x184   :  { %v457_v47 = vpop.xlane.xlu1 %456  ;;  %528 = vadd.xlane.f32.xlu1 %v1609_v25 }
 0x185   :  { %v2311_v9 = vsub.f32 %v2103_v57, %v457_v47 }
 0x187   :  { %v504_v31 = vmul.f32 1.442695, %v2311_v9 }
 0x188   :  { %v459_v12 = vpop.xlane.xlu0 %458 }
 0x189   :  { %1612 = vpow2.f32 %v504_v31 }
 0x18b   :  { %v1611_v3 = vpop.eup %1610 }
 0x18c   :  { %v461_v26 = vpop.xlane.xlu1 %460  ;;  %532 = vadd.xlane.f32.xlu1 %v1611_v3 }
 0x18d   :  { %v2315_v43 = vsub.f32 %v2130_v10, %v461_v26 }
 0x18f   :  { %v508_v41 = vmul.f32 1.442695, %v2315_v43 }
 0x190   :  { %v463_v23 = vpop.xlane.xlu0 %462 }
 0x191   :  { %1614 = vpow2.f32 %v508_v41  ;;  %v2351_v36 = vsub.f32 %v2495_v38, %v463_v23 }
 0x193   :  { %v1613_v13 = vpop.eup %1612 }
 0x194   :  { %v465_v11 = vpop.xlane.xlu1 %464  ;;  %536 = vadd.xlane.f32.xlu1 %v1613_v13 }
 0x195   :  { %v2319_v57 = vsub.f32 %v2171_v21, %v465_v11 }
 0x197   :  { %v512_v35 = vmul.f32 1.442695, %v2319_v57 }
 0x198   :  { %v467_v30 = vpop.xlane.xlu0 %466 }
 0x199   :  { %1616 = vpow2.f32 %v512_v35  ;;  %v2355_v46 = vsub.f32 %v2496_v55, %v467_v30 }
 0x19b   :  { %v1615_v2 = vpop.eup %1614  ;;  %v514_v28 = vmul.f32 1.442695, %v2355_v46 }
 0x19c   :  { %v469_v39 = vpop.xlane.xlu1 %468  ;;  %540 = vadd.xlane.f32.xlu1 %v1615_v2  ;;  %v471_v10 = vpop.xlane.xlu0 %470 }
 0x19d   :  { %v2323_v1 = vsub.f32 %v2229_v52, %v469_v39  ;;  %v2326_v58 = vsub.f32 %v2491_v7, %v471_v10  ;;  %v2338_v52 = vsub.f32 %v2493_v37, %v455_v6 }
 0x19f   :  { %v516_v21 = vmul.f32 1.442695, %v2323_v1  ;;  %v518_v40 = vmul.f32 1.442695, %v2326_v58  ;;  %v502_v18 = vmul.f32 1.442695, %v2338_v52 }
 0x1a0   :  { %v473_v24 = vpop.xlane.xlu1 %472  ;;  %v475_v0 = vpop.xlane.xlu0 %474 }
 0x1a1   :  { %1618 = vpow2.f32 %v516_v21  ;;  %v2334_v27 = vsub.f32 %v2210_v49, %v473_v24  ;;  %v2494_v49 = vld [vmem:[#allocation7_spill] sm:$0xff]  ;;  %v2359_v22 = vsub.f32 %v2497_v56, %v475_v0 }
 0x1a2   :  { %1620 = vpow2.f32 %v518_v40  ;;  %v2346_v48 = vsub.f32 %v2494_v49, %v459_v12 }
 0x1a3   :  { %v1617_v51 = vpop.eup %1616  ;;  %v520_v17 = vmul.f32 1.442695, %v2334_v27  ;;  %v522_v15 = vmul.f32 1.442695, %v2359_v22 }
 0x1a4   :  { %v477_v4 = vpop.xlane.xlu1 %476  ;;  %544 = vadd.xlane.f32.xlu1 %v1617_v51  ;;  %v506_v14 = vmul.f32 1.442695, %v2346_v48 }
 0x1a5   :  { %1622 = vpow2.f32 %v520_v17  ;;  %v2342_v42 = vsub.f32 %v2233_v19, %v477_v4  ;;  %v510_v19 = vmul.f32 1.442695, %v2351_v36 }
 0x1a6   :  { %1624 = vpow2.f32 %v498_v29 }
 0x1a7   :  { %v524_v53 = vmul.f32 1.442695, %v2342_v42 }
 0x1a9   :  { %1626 = vpow2.f32 %v524_v53 }
 0x1aa   :  { %1628 = vpow2.f32 %v502_v18 }
 0x1ab   :  { %v1619_v44 = vpop.eup %1618  ;;  %1630 = vpow2.f32 %v506_v14 }
 0x1ac   :  { %v1621_v62 = vpop.eup %1620  ;;  %548 = vadd.xlane.f32.xlu1 %v1619_v44  ;;  %1632 = vpow2.f32 %v510_v19 }
 0x1ad   :  { %550 = vadd.xlane.f32.xlu0 %v1621_v62  ;;  %1634 = vpow2.f32 %v514_v28 }
 0x1ae   :  { %1636 = vpow2.f32 %v522_v15 }
 0x1af   :  { %v1623_v16 = vpop.eup %1622 }
 0x1b0   :  { %v1625_v50 = vpop.eup %1624  ;;  %552 = vadd.xlane.f32.xlu1 %v1623_v16 }
 0x1b1   :  { %530 = vadd.xlane.f32.xlu0 %v1625_v50 }
 0x1b3   :  { %v1627_v60 = vpop.eup %1626 }
 0x1b4   :  { %v1629_v8 = vpop.eup %1628  ;;  %556 = vadd.xlane.f32.xlu1 %v1627_v60 }
 0x1b5   :  { %534 = vadd.xlane.f32.xlu0 %v1629_v8  ;;  %v1631_v32 = vpop.eup %1630 }
 0x1b6   :  { %v1633_v33 = vpop.eup %1632 }
 0x1b7   :  { %v1635_v59 = vpop.eup %1634 }
 0x1b8   :  { %v1637_v5 = vpop.eup %1636 }
 0x1b9   :  { %538 = vadd.xlane.f32.xlu0 %v1631_v32 }
 0x1bd   :  { %542 = vadd.xlane.f32.xlu0 %v1633_v33 }
 0x1c1   :  { %546 = vadd.xlane.f32.xlu0 %v1635_v59 }
 0x1c5   :  { %554 = vadd.xlane.f32.xlu0 %v1637_v5 }
 0x1ed   :  { %v1494_v63 = vpop.f32.mrb[24].mxu0 }
 0x1ee   :  { %v1028_v25 = vpop.f32.mrb[25].mxu0  ;;  %v1108_v17 = vmul.f32 -0.5, %v1494_v63 }
 0x1ef   :  { %v1107_v40 = vmul.f32 -0.5, %v1028_v25 }
 0x1f1   :  { %v1497_v47 = vpop.f32.mrb[26].mxu0 }
 0x1f2   :  { %v1038_v31 = vpop.f32.mrb[27].mxu0  ;;  %v1110_v33 = vmul.f32 -0.5, %v1497_v47 }
 0x1f5   :  { %v2362_v3 = vpop.f32.mrb[28].mxu0 }
 0x1f6   :  { %v1048_v6 = vpop.f32.mrb[29].mxu0 }
 0x1f9   :  { %v2364_v26 = vpop.f32.mrb[30].mxu0 }
 0x1fa   :  { %v2366_v41 = vpop.f32.mrb[31].mxu0 }
 0x1fd   :  { %v2368_v12 = vpop.f32.mrb[32].mxu0 }
 0x1fe   :  { %v2370_v13 = vpop.f32.mrb[33].mxu0 }
 0x201   :  { %v2372_v23 = vpop.f32.mrb[34].mxu0 }
 0x202   :  { %v2374_v11 = vpop.f32.mrb[35].mxu0 }
 0x205   :  { %v2376_v35 = vpop.f32.mrb[36].mxu0 }
 0x206   :  { %v2378_v30 = vpop.f32.mrb[37].mxu0 }
 0x209   :  { %v2380_v2 = vpop.f32.mrb[38].mxu0 }
 0x20a   :  { %v2382_v39 = vpop.f32.mrb[39].mxu0 }
 0x20d   :  { %v527_v10 = vpop.xlane.xlu0 %526 }
 0x20e   :  { %1638 = vlog2.f32 %v527_v10 }
 0x211   :  { %v529_v7 = vpop.xlane.xlu1 %528 }
 0x212   :  { %1640 = vlog2.f32 %v529_v7 }
 0x218   :  { %v1639_v45 = vpop.eup %1638 }
 0x219   :  { %v559_v21 = vmul.f32 0.6931472, %v1639_v45  ;;  %v533_v49 = vpop.xlane.xlu1 %532 }
 0x21a   :  { %1642 = vlog2.f32 %v533_v49 }
 0x21b   :  { %v590_v24 = vsub.f32 %v2299_v34, %v559_v21 }
 0x21c   :  { %v1641_v29 = vpop.eup %1640 }
 0x21d   :  { %v561_v37 = vmul.f32 0.6931472, %v1641_v29  ;;  %v1123_v51 = vadd.f32 %v1107_v40, %v590_v24  ;;  %v1112_v40 = vmul.f32 -0.5, %v2362_v3 }
 0x21f   :  { %v591_v4 = vsub.f32 %v2303_v20, %v561_v37  ;;  %1139 = vxpose.xlu0.b32.start [1/16] %v1123_v51, 128  ;;  %v1109_v20 = vmul.f32 -0.5, %v1038_v31  ;;  %v1111_v31 = vmul.f32 -0.5, %v1048_v6  ;;  %v1113_v6 = vmul.f32 -0.5, %v2366_v41 }
 0x221   :  { %v1124_v18 = vadd.f32 %v1108_v17, %v591_v4  ;;  %v537_v38 = vpop.xlane.xlu1 %536 }
 0x223   :  { %1140 = vxpose.xlu0.b32.cont [2/16] %v1124_v18, 128  ;;  %v1114_v18 = vmul.f32 -0.5, %v2364_v26  ;;  %v1116_v26 = vmul.f32 -0.5, %v2368_v12 }
 0x224   :  { %v1643_v34 = vpop.eup %1642 }
 0x225   :  { %v565_v55 = vmul.f32 0.6931472, %v1643_v34 }
 0x227   :  { %v593_v56 = vsub.f32 %v2307_v54, %v565_v55 }
 0x229   :  { %v541_v16 = vpop.xlane.xlu1 %540  ;;  %v1126_v25 = vadd.f32 %v1110_v33, %v593_v56  ;;  %v1118_v56 = vmul.f32 -0.5, %v2372_v23 }
 0x231   :  { %v545_v5 = vpop.xlane.xlu1 %544 }
 0x239   :  { %v549_v24 = vpop.xlane.xlu1 %548 }
 0x23a   :  { %v551_v53 = vpop.xlane.xlu0 %550 }
 0x23d   :  { %v553_v49 = vpop.xlane.xlu1 %552 }
 0x23e   :  { %v531_v14 = vpop.xlane.xlu0 %530 }
 0x23f   :  { %1644 = vlog2.f32 %v531_v14 }
 0x241   :  { %v557_v55 = vpop.xlane.xlu1 %556 }
 0x242   :  { %v535_v44 = vpop.xlane.xlu0 %534 }
 0x243   :  { %1646 = vlog2.f32 %v535_v44  ;;  %v1115_v44 = vmul.f32 -0.5, %v2370_v13  ;;  %v1117_v13 = vmul.f32 -0.5, %v2374_v11 }
 0x244   :  { %1648 = vlog2.f32 %v537_v38 }
 0x246   :  { %v539_v62 = vpop.xlane.xlu0 %538 }
 0x247   :  { %1650 = vlog2.f32 %v539_v62 }
 0x248   :  { %1652 = vlog2.f32 %v541_v16 }
 0x249   :  { %v1645_v19 = vpop.eup %1644 }
 0x24a   :  { %v563_v0 = vmul.f32 0.6931472, %v1645_v19  ;;  %v543_v8 = vpop.xlane.xlu0 %542 }
 0x24b   :  { %1654 = vlog2.f32 %v543_v8 }
 0x24c   :  { %v592_v50 = vsub.f32 %v2329_v61, %v563_v0  ;;  %1656 = vlog2.f32 %v545_v5 }
 0x24d   :  { %v1647_v28 = vpop.eup %1646 }
 0x24e   :  { %v567_v60 = vmul.f32 0.6931472, %v1647_v28  ;;  %v1125_v15 = vadd.f32 %v1109_v20, %v592_v50  ;;  %v1649_v32 = vpop.eup %1648  ;;  %v547_v54 = vpop.xlane.xlu0 %546 }
 0x24f   :  { %v569_v59 = vmul.f32 0.6931472, %v1649_v32  ;;  %1658 = vlog2.f32 %v547_v54 }
 0x250   :  { %1141 = vxpose.xlu0.b32.cont [3/16] %v1125_v15, 128  ;;  %v594_v63 = vsub.f32 %v2338_v52, %v567_v60  ;;  %1660 = vlog2.f32 %v549_v24 }
 0x251   :  { %v1651_v10 = vpop.eup %1650  ;;  %v595_v61 = vsub.f32 %v2311_v9, %v569_v59  ;;  %1662 = vlog2.f32 %v551_v53 }
 0x252   :  { %v571_v7 = vmul.f32 0.6931472, %v1651_v10  ;;  %v1127_v45 = vadd.f32 %v1111_v31, %v594_v63  ;;  %v1653_v21 = vpop.eup %1652  ;;  %1664 = vlog2.f32 %v553_v49  ;;  %v555_v62 = vpop.xlane.xlu0 %554 }
 0x253   :  { %v573_v47 = vmul.f32 0.6931472, %v1653_v21  ;;  %v1128_v52 = vadd.f32 %v1112_v40, %v595_v61  ;;  %1666 = vlog2.f32 %v555_v62 }
 0x254   :  { %1142 = vxpose.xlu0.b32.cont [4/16] %v1126_v25, 128  ;;  %v596_v29 = vsub.f32 %v2346_v48, %v571_v7  ;;  %1668 = vlog2.f32 %v557_v55 }
 0x255   :  { %v1655_v37 = vpop.eup %1654  ;;  %v597_v9 = vsub.f32 %v2315_v43, %v573_v47 }
 0x256   :  { %v575_v51 = vmul.f32 0.6931472, %v1655_v37  ;;  %v1129_v17 = vadd.f32 %v1113_v6, %v596_v29  ;;  %v1657_v4 = vpop.eup %1656 }
 0x257   :  { %v577_v3 = vmul.f32 0.6931472, %v1657_v4  ;;  %v1130_v48 = vadd.f32 %v1114_v18, %v597_v9 }
 0x258   :  { %1143 = vxpose.xlu0.b32.cont [5/16] %v1127_v45, 128  ;;  %v598_v14 = vsub.f32 %v2351_v36, %v575_v51 }
 0x259   :  { %v1659_v38 = vpop.eup %1658  ;;  %v599_v41 = vsub.f32 %v2319_v57, %v577_v3 }
 0x25a   :  { %v579_v43 = vmul.f32 0.6931472, %v1659_v38  ;;  %v1131_v34 = vadd.f32 %v1115_v44, %v598_v14  ;;  %v1661_v19 = vpop.eup %1660 }
 0x25b   :  { %v581_v53 = vmul.f32 0.6931472, %v1661_v19  ;;  %v1132_v16 = vadd.f32 %v1116_v26, %v599_v41  ;;  %v1663_v0 = vpop.eup %1662 }
 0x25c   :  { %1144 = vxpose.xlu0.b32.cont [6/16] %v1128_v52, 128  ;;  %v600_v36 = vsub.f32 %v2355_v46, %v579_v43  ;;  %v583_v20 = vmul.f32 0.6931472, %v1663_v0  ;;  %v1665_v28 = vpop.eup %1664  ;;  %v1119_v46 = vmul.f32 -0.5, %v2378_v30  ;;  %v1122_v30 = vmul.f32 -0.5, %v2380_v2 }
 0x25d   :  { %v601_v57 = vsub.f32 %v2323_v1, %v581_v53  ;;  %v585_v60 = vmul.f32 0.6931472, %v1665_v28  ;;  %v1667_v15 = vpop.eup %1666  ;;  %v1120_v1 = vmul.f32 -0.5, %v2376_v35 }
 0x25e   :  { %v1133_v50 = vadd.f32 %v1117_v13, %v600_v36  ;;  %v602_v12 = vsub.f32 %v2326_v58, %v583_v20  ;;  %v587_v32 = vmul.f32 0.6931472, %v1667_v15  ;;  %v1669_v59 = vpop.eup %1668  ;;  %v1121_v58 = vmul.f32 -0.5, %v2382_v39 }
 0x25f   :  { %v1134_v8 = vadd.f32 %v1118_v56, %v601_v57  ;;  %v603_v11 = vsub.f32 %v2334_v27, %v585_v60  ;;  %v589_v5 = vmul.f32 0.6931472, %v1669_v59 }
 0x260   :  { %1145 = vxpose.xlu0.b32.cont [7/16] %v1129_v17, 128  ;;  %v1135_v33 = vadd.f32 %v1119_v46, %v602_v12  ;;  %v604_v23 = vsub.f32 %v2359_v22, %v587_v32 }
 0x261   :  { %v1136_v63 = vadd.f32 %v1120_v1, %v603_v11  ;;  %v605_v25 = vsub.f32 %v2342_v42, %v589_v5 }
 0x262   :  { %v1137_v10 = vadd.f32 %v1121_v58, %v604_v23 }
 0x263   :  { %v1138_v27 = vadd.f32 %v1122_v30, %v605_v25 }
 0x264   :  { %1146 = vxpose.xlu0.b32.cont [8/16] %v1130_v48, 128 }
 0x268   :  { %1147 = vxpose.xlu0.b32.cont [9/16] %v1131_v34, 128 }
 0x26c   :  { %1148 = vxpose.xlu0.b32.cont [10/16] %v1132_v16, 128 }
 0x270   :  { %1149 = vxpose.xlu0.b32.cont [11/16] %v1133_v50, 128 }
 0x274   :  { %1150 = vxpose.xlu0.b32.cont [12/16] %v1134_v8, 128 }
 0x278   :  { %1151 = vxpose.xlu0.b32.cont [13/16] %v1135_v33, 128 }
 0x27c   :  { %1152 = vxpose.xlu0.b32.cont [14/16] %v1136_v63, 128 }
 0x280   :  { %1153 = vxpose.xlu0.b32.cont [15/16] %v1137_v10, 128 }
 0x284   :  { %1154 = vxpose.xlu0.b32.end [16/16] %v1138_v27, 128 }
 0x2c8   :  { %v1155_v31 = vpop.trf.xlu0 }
 0x2cc   :  { %v1156_v61 = vpop.trf.xlu0 }
 0x2d0   :  { %v1157_v7 = vpop.trf.xlu0 }
 0x2d4   :  { %v1158_v35 = vpop.trf.xlu0 }
 0x2d8   :  { %v1159_v54 = vpop.trf.xlu0 }
 0x2d9   :  { %v1171_v37 = vmax.f32 %v1155_v31, %v1159_v54 }
 0x2dc   :  { %v1160_v45 = vpop.trf.xlu0 }
 0x2dd   :  { %v1172_v29 = vmax.f32 %v1156_v61, %v1160_v45 }
 0x2e0   :  { %v1161_v21 = vpop.trf.xlu0 }
 0x2e1   :  { %v1173_v6 = vmax.f32 %v1157_v7, %v1161_v21 }
 0x2e4   :  { %v1162_v22 = vpop.trf.xlu0 }
 0x2e5   :  { %v1174_v9 = vmax.f32 %v1158_v35, %v1162_v22 }
 0x2e8   :  { %v1163_v40 = vpop.trf.xlu0 }
 0x2e9   :  { %v1175_v17 = vmax.f32 %v1171_v37, %v1163_v40 }
 0x2ec   :  { %v1164_v47 = vpop.trf.xlu0 }
 0x2ed   :  { %v1176_v51 = vmax.f32 %v1172_v29, %v1164_v47 }
 0x2f0   :  { %v2411_v39 = vpop.trf.xlu0 }
 0x2f1   :  { %v1177_v4 = vmax.f32 %v1173_v6, %v2411_v39 }
 0x2f4   :  { %v2413_v24 = vpop.trf.xlu0 }
 0x2f5   :  { %v1178_v18 = vmax.f32 %v1174_v9, %v2413_v24 }
 0x2f8   :  { %v2415_v42 = vpop.trf.xlu0 }
 0x2f9   :  { %v1179_v14 = vmax.f32 %v1175_v17, %v2415_v42 }
 0x2fc   :  { %v2417_v2 = vpop.trf.xlu0 }
 0x2fd   :  { %v1180_v3 = vmax.f32 %v1176_v51, %v2417_v2 }
 0x2ff   :  { %v1183_v44 = vmax.f32 %v1179_v14, %v1180_v3 }
 0x300   :  { %v2419_v52 = vpop.trf.xlu0 }
 0x301   :  { %v1181_v48 = vmax.f32 %v1177_v4, %v2419_v52 }
 0x304   :  { %v2424_v49 = vpop.trf.xlu0 }
 0x305   :  { %v1182_v38 = vmax.f32 %v1178_v18, %v2424_v49 }
 0x307   :  { %v1184_v41 = vmax.f32 %v1181_v48, %v1182_v38 }
 0x309   :  { %v1185_v43 = vmax.f32 %v1183_v44, %v1184_v41 }
 0x30b   :  { %v1186_v62 = vrot.slane %v1185_v43, 4 }
 0x30d   :  { %v1187_v34 = vmax.f32 %v1185_v43, %v1186_v62 }
 0x30f   :  { %v1188_v19 = vrot.slane %v1187_v34, 2 }
 0x311   :  { %v1189_v26 = vmax.f32 %v1187_v34, %v1188_v19 }
 0x313   :  { %v1190_v53 = vrot.slane %v1189_v26, 1 }
 0x315   :  { %v2429_v55 = vmax.f32 %v1189_v26, %v1190_v53 }
 0x317   :  { %v1192_v36 = vsub.f32 %v1155_v31, %v2429_v55  ;;  %v1193_v16 = vsub.f32 %v1156_v61, %v2429_v55  ;;  %v1194_v0 = vsub.f32 %v1157_v7, %v2429_v55  ;;  %v1195_v13 = vsub.f32 %v1158_v35, %v2429_v55 }
 0x318   :  { %v1196_v50 = vsub.f32 %v1159_v54, %v2429_v55  ;;  %v1197_v56 = vsub.f32 %v1160_v45, %v2429_v55  ;;  %v1198_v60 = vsub.f32 %v1161_v21, %v2429_v55  ;;  %v1199_v15 = vsub.f32 %v1162_v22, %v2429_v55 }
 0x319   :  { %v1208_v57 = vmul.f32 1.442695, %v1192_v36  ;;  %v1210_v20 = vmul.f32 1.442695, %v1193_v16  ;;  %v1212_v28 = vmul.f32 1.442695, %v1194_v0  ;;  %v1200_v11 = vsub.f32 %v1163_v40, %v2429_v55 }
 0x31a   :  { %v1214_v12 = vmul.f32 1.442695, %v1195_v13  ;;  %v1216_v8 = vmul.f32 1.442695, %v1196_v50  ;;  %v1218_v46 = vmul.f32 1.442695, %v1197_v56  ;;  %v1201_v33 = vsub.f32 %v1164_v47, %v2429_v55 }
 0x31b   :  { %1670 = vpow2.f32 %v1208_v57  ;;  %v1220_v32 = vmul.f32 1.442695, %v1198_v60  ;;  %v1222_v59 = vmul.f32 1.442695, %v1199_v15  ;;  %v1202_v23 = vsub.f32 %v2411_v39, %v2429_v55  ;;  %v1264_v56 = vld [vmem:[%s2471_s2] sm:$0x1] }
 0x31c   :  { %1672 = vpow2.f32 %v1210_v20  ;;  %v1224_v63 = vmul.f32 1.442695, %v1200_v11  ;;  %v1203_v10 = vsub.f32 %v2413_v24, %v2429_v55  ;;  %v1226_v30 = vmul.f32 1.442695, %v1201_v33 }
 0x31d   :  { %1674 = vpow2.f32 %v1212_v28  ;;  %v1204_v61 = vsub.f32 %v2415_v42, %v2429_v55  ;;  %v1228_v7 = vmul.f32 1.442695, %v1202_v23  ;;  %v1205_v45 = vsub.f32 %v2417_v2, %v2429_v55 }
 0x31e   :  { %1676 = vpow2.f32 %v1214_v12  ;;  %v1230_v21 = vmul.f32 1.442695, %v1203_v10  ;;  %v1206_v47 = vsub.f32 %v2419_v52, %v2429_v55  ;;  %v1207_v42 = vsub.f32 %v2424_v49, %v2429_v55 }
 0x31f   :  { %1678 = vpow2.f32 %v1216_v8  ;;  %v1232_v39 = vmul.f32 1.442695, %v1204_v61  ;;  %v1234_v37 = vmul.f32 1.442695, %v1205_v45 }
 0x320   :  { %1680 = vpow2.f32 %v1218_v46  ;;  %v1236_v2 = vmul.f32 1.442695, %v1206_v47  ;;  %v1238_v4 = vmul.f32 1.442695, %v1207_v42 }
 0x321   :  { %1682 = vpow2.f32 %v1220_v32 }
 0x322   :  { %1684 = vpow2.f32 %v1222_v59 }
 0x323   :  { %1686 = vpow2.f32 %v1224_v63 }
 0x324   :  { %1688 = vpow2.f32 %v1226_v30 }
 0x325   :  { %v1671_v1 = vpop.eup %1670  ;;  %1690 = vpow2.f32 %v1228_v7 }
 0x326   :  { %v1673_v5 = vpop.eup %1672  ;;  %1692 = vpow2.f32 %v1230_v21 }
 0x327   :  { %v1240_v58 = vadd.f32 %v1673_v5, %v1671_v1  ;;  %v1675_v25 = vpop.eup %1674  ;;  %1694 = vpow2.f32 %v1232_v39 }
 0x328   :  { %v1677_v31 = vpop.eup %1676  ;;  %1696 = vpow2.f32 %v1234_v37 }
 0x329   :  { %v1241_v27 = vadd.f32 %v1675_v25, %v1240_v58  ;;  %v1679_v54 = vpop.eup %1678  ;;  %1698 = vpow2.f32 %v1236_v2 }
 0x32a   :  { %v1681_v40 = vpop.eup %1680  ;;  %1700 = vpow2.f32 %v1238_v4 }
 0x32b   :  { %v1242_v35 = vadd.f32 %v1677_v31, %v1241_v27  ;;  %v1683_v29 = vpop.eup %1682 }
 0x32c   :  { %v1685_v9 = vpop.eup %1684 }
 0x32d   :  { %v1243_v22 = vadd.f32 %v1679_v54, %v1242_v35  ;;  %v1687_v17 = vpop.eup %1686 }
 0x32e   :  { %v1689_v3 = vpop.eup %1688 }
 0x32f   :  { %v1244_v24 = vadd.f32 %v1681_v40, %v1243_v22  ;;  %v1691_v14 = vpop.eup %1690 }
 0x330   :  { %v1693_v38 = vpop.eup %1692 }
 0x331   :  { %v1245_v6 = vadd.f32 %v1683_v29, %v1244_v24  ;;  %v1695_v49 = vpop.eup %1694 }
 0x332   :  { %v1697_v43 = vpop.eup %1696 }
 0x333   :  { %v1246_v51 = vadd.f32 %v1685_v9, %v1245_v6  ;;  %v1699_v34 = vpop.eup %1698 }
 0x334   :  { %v1701_v26 = vpop.eup %1700 }
 0x335   :  { %v1247_v18 = vadd.f32 %v1687_v17, %v1246_v51 }
 0x337   :  { %v1248_v52 = vadd.f32 %v1689_v3, %v1247_v18 }
 0x339   :  { %v1249_v48 = vadd.f32 %v1691_v14, %v1248_v52 }
 0x33b   :  { %v1250_v44 = vadd.f32 %v1693_v38, %v1249_v48 }
 0x33d   :  { %v1251_v41 = vadd.f32 %v1695_v49, %v1250_v44 }
 0x33f   :  { %v1252_v62 = vadd.f32 %v1697_v43, %v1251_v41 }
 0x341   :  { %v1253_v19 = vadd.f32 %v1699_v34, %v1252_v62 }
 0x343   :  { %v1254_v53 = vadd.f32 %v1701_v26, %v1253_v19 }
 0x345   :  { %v1255_v36 = vrot.slane %v1254_v53, 4 }
 0x347   :  { %v1256_v16 = vadd.f32 %v1255_v36, %v1254_v53 }
 0x349   :  { %v1257_v0 = vrot.slane %v1256_v16, 2 }
 0x34b   :  { %v1258_v13 = vadd.f32 %v1257_v0, %v1256_v16 }
 0x34d   :  { %v1259_v57 = vrot.slane %v1258_v13, 1 }
 0x34f   :  { %v1260_v20 = vadd.f32 %v1259_v57, %v1258_v13 }
 0x351   :  { %1702 = vlog2.f32 %v1260_v20 }
 0x35b   :  { %v1703_v50 = vpop.eup %1702 }
 0x35c   :  { %v1262_v28 = vmul.f32 0.6931472, %v1703_v50 }
 0x35e   :  { %v1263_v12 = vadd.f32 %v1262_v28, %v2429_v55 }
 0x360   :  { %v1265_v60 = vmul.f32 %v1264_v56, %v1263_v12 }
 0x362   :  { %v1266_v8 = vsub.f32 0.0, %v1265_v60 }
 0x364   :  { %1267 = vst [vmem:[#allocation2] sm:$0x1] %v1266_v8 }
 0x365   :  { %1715 = shalt.err (!%p1712_p4)
}
 0x366   :  { %s1716_s2 = scalar_lea.hbm %s2476_s7, 16 }
 0x367   :  { %p1717_p5 = scmp.ne.s32.totalorder %s2476_s7, %s1716_s2  ;;  %p1720_p6 = scmp.lt.u32.totalorder %s1716_s2, %s2476_s7 }
 0x369   :  { %p1722_p7 = pnand %p1720_p6, %p1717_p5 }
 0x36b   :  { %1725 = shalt.err (!%p1722_p7)
}
 0x36c   :  { %1277 = dma.vmem_to_hbm [thread:$0]  %s1275_s1, 16, %s2476_s7, [#allocation3]  }
 0x36d   :  { %1726 = dma.done.wait [#allocation3], 16  }
 0x36e   :  { %1727 = vsyncadd [#allocation3], 4294967280 }
 0x36f   :  { %1281 = vsyncpa [#allocation3], 1 }

</bundles_post_ra>
